<compile_context>
chip_gen: v5e
topology: v5e:2x2
jax: 0.10.0
libtpu: 0.0.40
codegen_flags: <defaults>
</compile_context>

<pallas_src>
import functools

import jax
import jax.numpy as jnp
from jax import lax
from jax.experimental import pallas as pl
from jax.experimental.pallas import tpu as pltpu

LANE = 128
SUB = 8          # padded batch (one sublane tile)
OFF_R, OFF_Z, OFF_N, OFF_Z2 = 0, 32, 64, 96   # lane groups: r, z, n(+h home), z-dup


def gru_forward_kernel(tok_ref, table_ref, whh_ref, bhn_ref, wout_ref, bout_ref,
                       out_ref, gi_scratch, *, seq_len, batch):
    """Fused embedding-lookup + GRU recurrence + output Linear.

    tok_ref    : (B, T)      int32, SMEM (scalar-indexed token ids)
    table_ref  : (V, 1, 128) f32,  VMEM  fused embedding+input-projection table
    whh_ref    : (128, 128)  bf16, VMEM  compact hidden->gates weights
    bhn_ref    : (1, 128)    f32,  VMEM  b_hn on the n lanes only
    wout_ref   : (128, 128)  bf16, VMEM  output Linear (rows = h lanes)
    bout_ref   : (1, 128)    f32
    out_ref    : (8, 128)    f32   padded logits
    gi_scratch : (T, 8, 128) f32   per-step gate inputs (aligned tiles)
    """
    T, B = seq_len, batch

    # --- Gather the fused gate-input rows for every (t, b) once, up front,
    # so each recurrence step reads one aligned (8, 128) tile.
    gi_scratch[...] = jnp.zeros_like(gi_scratch)
    for t in range(T):
        for b in range(B):
            gi_scratch[t, pl.ds(b, 1), :] = table_ref[tok_ref[b, t]]

    whh = whh_ref[...]            # (128, 128) bf16, stays in vregs
    bhn = bhn_ref[...]            # (1, 128)   f32

    def step(gi, h):
        # Serial critical path: matmul -> add -> sigmoid -> roll -> mul/add ->
        # tanh -> update.  The z roll runs in parallel with the tanh branch.
        gh = jnp.dot(h.astype(jnp.bfloat16), whh,
                     preferred_element_type=jnp.float32) + bhn        # (8,128)
        s = jax.nn.sigmoid(gi + gh)                # r@[0:32), z@[32:64)+[96:128)
        r_n = pltpu.roll(s, shift=64, axis=1)      # r -> n lanes (dir-symmetric)
        z_n = pltpu.roll(s, shift=32, axis=1)      # z (or z-dup) -> n lanes
        n = jnp.tanh(gi + r_n * gh)                # valid on n lanes
        return n + z_n * (h - n)                   # == (1-z)*n + z*h

    h = jnp.zeros((SUB, LANE), jnp.float32)
    if T <= 16:
        # Short sequence: full static unroll (LLO can interleave across steps).
        for t in range(T):
            h = step(gi_scratch[t], h)
    else:
        # Long sequence: bound vreg live ranges with a rolled loop.
        h = lax.fori_loop(0, T, lambda t, hh: step(gi_scratch[t], hh), h,
                          unroll=2)

    # Output Linear on the final hidden state (h lanes = [64, 64+H); all other
    # lanes multiply zero rows of wout, so they cannot affect the logits).
    out_ref[...] = jnp.dot(h.astype(jnp.bfloat16), wout_ref[...],
                           preferred_element_type=jnp.float32) + bout_ref[...]


def init_params(key, dictionary_size, embedding_size, num_hiddens, num_classes):
    """Deterministic parameter init with PyTorch-style shapes."""
    ks = jax.random.split(key, 8)
    H, E, C, V = num_hiddens, embedding_size, num_classes, dictionary_size
    s = 1.0 / jnp.sqrt(H)
    return {
        "embedding": jax.random.normal(ks[0], (V, E), jnp.float32),          # nn.Embedding
        "w_ih": jax.random.uniform(ks[1], (3 * H, E), jnp.float32, -s, s),   # GRU weight_ih_l0
        "w_hh": jax.random.uniform(ks[2], (3 * H, H), jnp.float32, -s, s),   # GRU weight_hh_l0
        "b_ih": jax.random.uniform(ks[3], (3 * H,), jnp.float32, -s, s),
        "b_hh": jax.random.uniform(ks[4], (3 * H,), jnp.float32, -s, s),
        "w_out": jax.random.uniform(ks[5], (C, H), jnp.float32, -s, s),      # nn.Linear weight
        "b_out": jax.random.uniform(ks[6], (C,), jnp.float32, -s, s),
    }


def prepare_params(params):
    """One-time packing of PyTorch-layout weights into the kernel layout.

    Runs at init, NOT inside the forward path (perf-review item 1)."""
    emb = params["embedding"]
    w_ih, w_hh = params["w_ih"], params["w_hh"]
    b_ih, b_hh = params["b_ih"], params["b_hh"]
    w_out, b_out = params["w_out"], params["b_out"]
    V, _E = emb.shape
    H = w_hh.shape[1]
    C = b_out.shape[0]
    assert H <= 32 and C <= LANE, "compact single-tile gate layout needs H<=32, C<=128"

    W_i = [w_ih[g * H:(g + 1) * H] for g in range(3)]   # W_ir, W_iz, W_in  (H, E)
    W_h = [w_hh[g * H:(g + 1) * H] for g in range(3)]   # W_hr, W_hz, W_hn  (H, H)
    b_i = [b_ih[g * H:(g + 1) * H] for g in range(3)]
    b_h = [b_hh[g * H:(g + 1) * H] for g in range(3)]

    # Fused embedding + input-projection table (f32).  b_hr / b_hz are folded
    # in; b_hn must stay inside the r*(...) term so it is kept separate.
    gi_blocks = [
        (OFF_R,  emb @ W_i[0].T + b_i[0] + b_h[0]),
        (OFF_Z,  emb @ W_i[1].T + b_i[1] + b_h[1]),
        (OFF_N,  emb @ W_i[2].T + b_i[2]),
        (OFF_Z2, emb @ W_i[1].T + b_i[1] + b_h[1]),     # z duplicate (roll-dir proof)
    ]
    gi_table = jnp.zeros((V, LANE), jnp.float32)
    for off, blk in gi_blocks:
        gi_table = gi_table.at[:, off:off + H].set(blk)
    gi_table = gi_table.reshape(V, 1, LANE)             # leading-axis indexed in-kernel

    # Compact hidden->gates weights.  h lives in lanes [OFF_N, OFF_N+H); all
    # other rows are zero, so garbage in the other lanes of h is harmless.
    whh_c = jnp.zeros((LANE, LANE), jnp.float32)
    for off, W in [(OFF_R, W_h[0]), (OFF_Z, W_h[1]), (OFF_N, W_h[2]), (OFF_Z2, W_h[1])]:
        whh_c = whh_c.at[OFF_N:OFF_N + H, off:off + H].set(W.T)
    bhn = jnp.zeros((1, LANE), jnp.float32).at[0, OFF_N:OFF_N + H].set(b_h[2])

    # Output Linear, rows aligned with h's home lanes, lane-dense 128-wide output.
    wout_c = jnp.zeros((LANE, LANE), jnp.float32).at[OFF_N:OFF_N + H, :C].set(w_out.T)
    bout_c = jnp.zeros((1, LANE), jnp.float32).at[0, :C].set(b_out)

    return {
        "gi_table": gi_table,
        "whh": whh_c.astype(jnp.bfloat16),
        "bhn": bhn,
        "wout": wout_c.astype(jnp.bfloat16),
        "bout": bout_c,
        "num_classes": C,
    }


def neural_network_forward(tokens, packed):
    """Equivalent of NeuralNetwork.forward for rnnClass=nn.GRU, batch > 1."""
    B, T = tokens.shape
    C = packed["num_classes"]
    kernel = functools.partial(gru_forward_kernel, seq_len=T, batch=B)
    smem = pl.BlockSpec(memory_space=pltpu.MemorySpace.SMEM)
    vmem = pl.BlockSpec(memory_space=pltpu.MemorySpace.VMEM)
    logits_p = pl.pallas_call(
        kernel,
        out_shape=jax.ShapeDtypeStruct((SUB, LANE), jnp.float32),
        in_specs=[smem, vmem, vmem, vmem, vmem, vmem],
        out_specs=vmem,
        scratch_shapes=[pltpu.VMEM((T, SUB, LANE), jnp.float32)],
    )(tokens.astype(jnp.int32), packed["gi_table"], packed["whh"],
      packed["bhn"], packed["wout"], packed["bout"])
    # TODO(synk): state[0].squeeze() would drop the batch dim when B == 1;
    # we assume B > 1 (as in the reference training data), so logits is (B, C).
    return logits_p[:B, :C]


def reference_forward(tokens, params):
    """Pure-JAX reference with matching f32-gi / bf16-matmul / f32-gate math."""
    H = params["w_hh"].shape[1]
    x = jnp.take(params["embedding"], tokens, axis=0)          # (B, T, E) f32
    B, T, _ = x.shape
    wih = params["w_ih"].T                                     # f32 (matches table)
    whh = params["w_hh"].T.astype(jnp.bfloat16)
    wout = params["w_out"].T.astype(jnp.bfloat16)
    h = jnp.zeros((B, H), jnp.float32)
    for t in range(T):
        gi = jnp.dot(x[:, t, :], wih) + params["b_ih"]
        gh = jnp.dot(h.astype(jnp.bfloat16), whh,
                     preferred_element_type=jnp.float32) + params["b_hh"]
        r = jax.nn.sigmoid(gi[:, :H] + gh[:, :H])
        z = jax.nn.sigmoid(gi[:, H:2 * H] + gh[:, H:2 * H])
        n = jnp.tanh(gi[:, 2 * H:] + r * gh[:, 2 * H:])
        h = (1.0 - z) * n + z * h
    return jnp.dot(h.astype(jnp.bfloat16), wout,
                   preferred_element_type=jnp.float32) + params["b_out"]


if __name__ == "__main__":
    dictionary_size = 50
    embedding_size = 32
    num_hiddens = 32
    num_classes = 4
    batch = 2
    seq_len = 8

    key = jax.random.PRNGKey(0)
    k_params, k_tokens = jax.random.split(key)
    params = init_params(k_params, dictionary_size, embedding_size,
                         num_hiddens, num_classes)
    tokens = jax.random.randint(k_tokens, (batch, seq_len), 0, dictionary_size)

    packed = prepare_params(params)          # one-time packing (hoisted out of forward)

    out = neural_network_forward(tokens, packed)
    out = jax.block_until_ready(out)

    ref = reference_forward(tokens, params)
    assert out.shape == (batch, num_classes)
    assert jnp.allclose(out, ref, atol=1e-3, rtol=1e-3)
    print("KERNEL_OK")
</pallas_src>

<mosaic_0001>
module attributes {stable_mosaic.version = 11 : i64} {
  func.func @gru_forward_kernel(%arg0: memref<2x8xi32, #tpu.memory_space<smem>>, %arg1: memref<50x1x128xf32, #tpu.memory_space<vmem>>, %arg2: memref<128x128xbf16, #tpu.memory_space<vmem>>, %arg3: memref<1x128xf32, #tpu.memory_space<vmem>>, %arg4: memref<128x128xbf16, #tpu.memory_space<vmem>>, %arg5: memref<1x128xf32, #tpu.memory_space<vmem>>, %arg6: memref<8x128xf32, #tpu.memory_space<vmem>>, %arg7: memref<8x8x128xf32, #tpu.memory_space<vmem>>) attributes {dimension_semantics = [], scalar_prefetch = 0 : i64, scratch_operands = 1 : i64, tpu.core_type = #tpu.core_type<tc>} {
    %cst = arith.constant 0.000000e+00 : f32
    %0 = vector.broadcast %cst : f32 to vector<8x8x128xf32>
    %c0 = arith.constant 0 : index
    %c0_0 = arith.constant 0 : index
    %c0_1 = arith.constant 0 : index
    %1 = vector.load %arg7[%c0, %c0_0, %c0_1] : memref<8x8x128xf32, #tpu.memory_space<vmem>>, vector<8x8x128xf32>
    tpu.vector_store %arg7[%c0, %c0_0, %c0_1], %0 {strides = array<i32>} : memref<8x8x128xf32, #tpu.memory_space<vmem>>, vector<8x8x128xf32>,
    %c0_2 = arith.constant 0 : index
    %c0_3 = arith.constant 0 : index
    %2 = memref.load %arg0[%c0_2, %c0_3] : memref<2x8xi32, #tpu.memory_space<smem>>
    %3 = arith.index_cast %2 : i32 to index
    %c0_4 = arith.constant 0 : index
    %c0_5 = arith.constant 0 : index
    %4 = vector.load %arg1[%3, %c0_4, %c0_5] : memref<50x1x128xf32, #tpu.memory_space<vmem>>, vector<1x1x128xf32>
    %5 = vector.shape_cast %4 : vector<1x1x128xf32> to vector<1x128xf32>
    %c0_6 = arith.constant 0 : index
    %c0_7 = arith.constant 0 : index
    %c0_8 = arith.constant 0 : index
    %6 = vector.load %arg7[%c0_6, %c0_7, %c0_8] : memref<8x8x128xf32, #tpu.memory_space<vmem>>, vector<1x1x128xf32>
    %7 = vector.shape_cast %6 : vector<1x1x128xf32> to vector<1x128xf32>
    %8 = vector.shape_cast %5 : vector<1x128xf32> to vector<1x1x128xf32>
    tpu.vector_store %arg7[%c0_6, %c0_7, %c0_8], %8 {strides = array<i32>} : memref<8x8x128xf32, #tpu.memory_space<vmem>>, vector<1x1x128xf32>,
    %c1 = arith.constant 1 : index
    %c0_9 = arith.constant 0 : index
    %9 = memref.load %arg0[%c1, %c0_9] : memref<2x8xi32, #tpu.memory_space<smem>>
    %10 = arith.index_cast %9 : i32 to index
    %c0_10 = arith.constant 0 : index
    %c0_11 = arith.constant 0 : index
    %11 = vector.load %arg1[%10, %c0_10, %c0_11] : memref<50x1x128xf32, #tpu.memory_space<vmem>>, vector<1x1x128xf32>
    %12 = vector.shape_cast %11 : vector<1x1x128xf32> to vector<1x128xf32>
    %c0_12 = arith.constant 0 : index
    %c1_13 = arith.constant 1 : index
    %c0_14 = arith.constant 0 : index
    %13 = vector.load %arg7[%c0_12, %c1_13, %c0_14] : memref<8x8x128xf32, #tpu.memory_space<vmem>>, vector<1x1x128xf32>
    %14 = vector.shape_cast %13 : vector<1x1x128xf32> to vector<1x128xf32>
    %15 = vector.shape_cast %12 : vector<1x128xf32> to vector<1x1x128xf32>
    tpu.vector_store %arg7[%c0_12, %c1_13, %c0_14], %15 {strides = array<i32>} : memref<8x8x128xf32, #tpu.memory_space<vmem>>, vector<1x1x128xf32>,
    %c0_15 = arith.constant 0 : index
    %c1_16 = arith.constant 1 : index
    %16 = memref.load %arg0[%c0_15, %c1_16] : memref<2x8xi32, #tpu.memory_space<smem>>
    %17 = arith.index_cast %16 : i32 to index
    %c0_17 = arith.constant 0 : index
    %c0_18 = arith.constant 0 : index
    %18 = vector.load %arg1[%17, %c0_17, %c0_18] : memref<50x1x128xf32, #tpu.memory_space<vmem>>, vector<1x1x128xf32>
    %19 = vector.shape_cast %18 : vector<1x1x128xf32> to vector<1x128xf32>
    %c1_19 = arith.constant 1 : index
    %c0_20 = arith.constant 0 : index
    %c0_21 = arith.constant 0 : index
    %20 = vector.load %arg7[%c1_19, %c0_20, %c0_21] : memref<8x8x128xf32, #tpu.memory_space<vmem>>, vector<1x1x128xf32>
    %21 = vector.shape_cast %20 : vector<1x1x128xf32> to vector<1x128xf32>
    %22 = vector.shape_cast %19 : vector<1x128xf32> to vector<1x1x128xf32>
    tpu.vector_store %arg7[%c1_19, %c0_20, %c0_21], %22 {strides = array<i32>} : memref<8x8x128xf32, #tpu.memory_space<vmem>>, vector<1x1x128xf32>,
    %c1_22 = arith.constant 1 : index
    %c1_23 = arith.constant 1 : index
    %23 = memref.load %arg0[%c1_22, %c1_23] : memref<2x8xi32, #tpu.memory_space<smem>>
    %24 = arith.index_cast %23 : i32 to index
    %c0_24 = arith.constant 0 : index
    %c0_25 = arith.constant 0 : index
    %25 = vector.load %arg1[%24, %c0_24, %c0_25] : memref<50x1x128xf32, #tpu.memory_space<vmem>>, vector<1x1x128xf32>
    %26 = vector.shape_cast %25 : vector<1x1x128xf32> to vector<1x128xf32>
    %c1_26 = arith.constant 1 : index
    %c1_27 = arith.constant 1 : index
    %c0_28 = arith.constant 0 : index
    %27 = vector.load %arg7[%c1_26, %c1_27, %c0_28] : memref<8x8x128xf32, #tpu.memory_space<vmem>>, vector<1x1x128xf32>
    %28 = vector.shape_cast %27 : vector<1x1x128xf32> to vector<1x128xf32>
    %29 = vector.shape_cast %26 : vector<1x128xf32> to vector<1x1x128xf32>
    tpu.vector_store %arg7[%c1_26, %c1_27, %c0_28], %29 {strides = array<i32>} : memref<8x8x128xf32, #tpu.memory_space<vmem>>, vector<1x1x128xf32>,
    %c0_29 = arith.constant 0 : index
    %c2 = arith.constant 2 : index
    %30 = memref.load %arg0[%c0_29, %c2] : memref<2x8xi32, #tpu.memory_space<smem>>
    %31 = arith.index_cast %30 : i32 to index
    %c0_30 = arith.constant 0 : index
    %c0_31 = arith.constant 0 : index
    %32 = vector.load %arg1[%31, %c0_30, %c0_31] : memref<50x1x128xf32, #tpu.memory_space<vmem>>, vector<1x1x128xf32>
    %33 = vector.shape_cast %32 : vector<1x1x128xf32> to vector<1x128xf32>
    %c2_32 = arith.constant 2 : index
    %c0_33 = arith.constant 0 : index
    %c0_34 = arith.constant 0 : index
    %34 = vector.load %arg7[%c2_32, %c0_33, %c0_34] : memref<8x8x128xf32, #tpu.memory_space<vmem>>, vector<1x1x128xf32>
    %35 = vector.shape_cast %34 : vector<1x1x128xf32> to vector<1x128xf32>
    %36 = vector.shape_cast %33 : vector<1x128xf32> to vector<1x1x128xf32>
    tpu.vector_store %arg7[%c2_32, %c0_33, %c0_34], %36 {strides = array<i32>} : memref<8x8x128xf32, #tpu.memory_space<vmem>>, vector<1x1x128xf32>,
    %c1_35 = arith.constant 1 : index
    %c2_36 = arith.constant 2 : index
    %37 = memref.load %arg0[%c1_35, %c2_36] : memref<2x8xi32, #tpu.memory_space<smem>>
    %38 = arith.index_cast %37 : i32 to index
    %c0_37 = arith.constant 0 : index
    %c0_38 = arith.constant 0 : index
    %39 = vector.load %arg1[%38, %c0_37, %c0_38] : memref<50x1x128xf32, #tpu.memory_space<vmem>>, vector<1x1x128xf32>
    %40 = vector.shape_cast %39 : vector<1x1x128xf32> to vector<1x128xf32>
    %c2_39 = arith.constant 2 : index
    %c1_40 = arith.constant 1 : index
    %c0_41 = arith.constant 0 : index
    %41 = vector.load %arg7[%c2_39, %c1_40, %c0_41] : memref<8x8x128xf32, #tpu.memory_space<vmem>>, vector<1x1x128xf32>
    %42 = vector.shape_cast %41 : vector<1x1x128xf32> to vector<1x128xf32>
    %43 = vector.shape_cast %40 : vector<1x128xf32> to vector<1x1x128xf32>
    tpu.vector_store %arg7[%c2_39, %c1_40, %c0_41], %43 {strides = array<i32>} : memref<8x8x128xf32, #tpu.memory_space<vmem>>, vector<1x1x128xf32>,
    %c0_42 = arith.constant 0 : index
    %c3 = arith.constant 3 : index
    %44 = memref.load %arg0[%c0_42, %c3] : memref<2x8xi32, #tpu.memory_space<smem>>
    %45 = arith.index_cast %44 : i32 to index
    %c0_43 = arith.constant 0 : index
    %c0_44 = arith.constant 0 : index
    %46 = vector.load %arg1[%45, %c0_43, %c0_44] : memref<50x1x128xf32, #tpu.memory_space<vmem>>, vector<1x1x128xf32>
    %47 = vector.shape_cast %46 : vector<1x1x128xf32> to vector<1x128xf32>
    %c3_45 = arith.constant 3 : index
    %c0_46 = arith.constant 0 : index
    %c0_47 = arith.constant 0 : index
    %48 = vector.load %arg7[%c3_45, %c0_46, %c0_47] : memref<8x8x128xf32, #tpu.memory_space<vmem>>, vector<1x1x128xf32>
    %49 = vector.shape_cast %48 : vector<1x1x128xf32> to vector<1x128xf32>
    %50 = vector.shape_cast %47 : vector<1x128xf32> to vector<1x1x128xf32>
    tpu.vector_store %arg7[%c3_45, %c0_46, %c0_47], %50 {strides = array<i32>} : memref<8x8x128xf32, #tpu.memory_space<vmem>>, vector<1x1x128xf32>,
    %c1_48 = arith.constant 1 : index
    %c3_49 = arith.constant 3 : index
    %51 = memref.load %arg0[%c1_48, %c3_49] : memref<2x8xi32, #tpu.memory_space<smem>>
    %52 = arith.index_cast %51 : i32 to index
    %c0_50 = arith.constant 0 : index
    %c0_51 = arith.constant 0 : index
    %53 = vector.load %arg1[%52, %c0_50, %c0_51] : memref<50x1x128xf32, #tpu.memory_space<vmem>>, vector<1x1x128xf32>
    %54 = vector.shape_cast %53 : vector<1x1x128xf32> to vector<1x128xf32>
    %c3_52 = arith.constant 3 : index
    %c1_53 = arith.constant 1 : index
    %c0_54 = arith.constant 0 : index
    %55 = vector.load %arg7[%c3_52, %c1_53, %c0_54] : memref<8x8x128xf32, #tpu.memory_space<vmem>>, vector<1x1x128xf32>
    %56 = vector.shape_cast %55 : vector<1x1x128xf32> to vector<1x128xf32>
    %57 = vector.shape_cast %54 : vector<1x128xf32> to vector<1x1x128xf32>
    tpu.vector_store %arg7[%c3_52, %c1_53, %c0_54], %57 {strides = array<i32>} : memref<8x8x128xf32, #tpu.memory_space<vmem>>, vector<1x1x128xf32>,
    %c0_55 = arith.constant 0 : index
    %c4 = arith.constant 4 : index
    %58 = memref.load %arg0[%c0_55, %c4] : memref<2x8xi32, #tpu.memory_space<smem>>
    %59 = arith.index_cast %58 : i32 to index
    %c0_56 = arith.constant 0 : index
    %c0_57 = arith.constant 0 : index
    %60 = vector.load %arg1[%59, %c0_56, %c0_57] : memref<50x1x128xf32, #tpu.memory_space<vmem>>, vector<1x1x128xf32>
    %61 = vector.shape_cast %60 : vector<1x1x128xf32> to vector<1x128xf32>
    %c4_58 = arith.constant 4 : index
    %c0_59 = arith.constant 0 : index
    %c0_60 = arith.constant 0 : index
    %62 = vector.load %arg7[%c4_58, %c0_59, %c0_60] : memref<8x8x128xf32, #tpu.memory_space<vmem>>, vector<1x1x128xf32>
    %63 = vector.shape_cast %62 : vector<1x1x128xf32> to vector<1x128xf32>
    %64 = vector.shape_cast %61 : vector<1x128xf32> to vector<1x1x128xf32>
    tpu.vector_store %arg7[%c4_58, %c0_59, %c0_60], %64 {strides = array<i32>} : memref<8x8x128xf32, #tpu.memory_space<vmem>>, vector<1x1x128xf32>,
    %c1_61 = arith.constant 1 : index
    %c4_62 = arith.constant 4 : index
    %65 = memref.load %arg0[%c1_61, %c4_62] : memref<2x8xi32, #tpu.memory_space<smem>>
    %66 = arith.index_cast %65 : i32 to index
    %c0_63 = arith.constant 0 : index
    %c0_64 = arith.constant 0 : index
    %67 = vector.load %arg1[%66, %c0_63, %c0_64] : memref<50x1x128xf32, #tpu.memory_space<vmem>>, vector<1x1x128xf32>
    %68 = vector.shape_cast %67 : vector<1x1x128xf32> to vector<1x128xf32>
    %c4_65 = arith.constant 4 : index
    %c1_66 = arith.constant 1 : index
    %c0_67 = arith.constant 0 : index
    %69 = vector.load %arg7[%c4_65, %c1_66, %c0_67] : memref<8x8x128xf32, #tpu.memory_space<vmem>>, vector<1x1x128xf32>
    %70 = vector.shape_cast %69 : vector<1x1x128xf32> to vector<1x128xf32>
    %71 = vector.shape_cast %68 : vector<1x128xf32> to vector<1x1x128xf32>
    tpu.vector_store %arg7[%c4_65, %c1_66, %c0_67], %71 {strides = array<i32>} : memref<8x8x128xf32, #tpu.memory_space<vmem>>, vector<1x1x128xf32>,
    %c0_68 = arith.constant 0 : index
    %c5 = arith.constant 5 : index
    %72 = memref.load %arg0[%c0_68, %c5] : memref<2x8xi32, #tpu.memory_space<smem>>
    %73 = arith.index_cast %72 : i32 to index
    %c0_69 = arith.constant 0 : index
    %c0_70 = arith.constant 0 : index
    %74 = vector.load %arg1[%73, %c0_69, %c0_70] : memref<50x1x128xf32, #tpu.memory_space<vmem>>, vector<1x1x128xf32>
    %75 = vector.shape_cast %74 : vector<1x1x128xf32> to vector<1x128xf32>
    %c5_71 = arith.constant 5 : index
    %c0_72 = arith.constant 0 : index
    %c0_73 = arith.constant 0 : index
    %76 = vector.load %arg7[%c5_71, %c0_72, %c0_73] : memref<8x8x128xf32, #tpu.memory_space<vmem>>, vector<1x1x128xf32>
    %77 = vector.shape_cast %76 : vector<1x1x128xf32> to vector<1x128xf32>
    %78 = vector.shape_cast %75 : vector<1x128xf32> to vector<1x1x128xf32>
    tpu.vector_store %arg7[%c5_71, %c0_72, %c0_73], %78 {strides = array<i32>} : memref<8x8x128xf32, #tpu.memory_space<vmem>>, vector<1x1x128xf32>,
    %c1_74 = arith.constant 1 : index
    %c5_75 = arith.constant 5 : index
    %79 = memref.load %arg0[%c1_74, %c5_75] : memref<2x8xi32, #tpu.memory_space<smem>>
    %80 = arith.index_cast %79 : i32 to index
    %c0_76 = arith.constant 0 : index
    %c0_77 = arith.constant 0 : index
    %81 = vector.load %arg1[%80, %c0_76, %c0_77] : memref<50x1x128xf32, #tpu.memory_space<vmem>>, vector<1x1x128xf32>
    %82 = vector.shape_cast %81 : vector<1x1x128xf32> to vector<1x128xf32>
    %c5_78 = arith.constant 5 : index
    %c1_79 = arith.constant 1 : index
    %c0_80 = arith.constant 0 : index
    %83 = vector.load %arg7[%c5_78, %c1_79, %c0_80] : memref<8x8x128xf32, #tpu.memory_space<vmem>>, vector<1x1x128xf32>
    %84 = vector.shape_cast %83 : vector<1x1x128xf32> to vector<1x128xf32>
    %85 = vector.shape_cast %82 : vector<1x128xf32> to vector<1x1x128xf32>
    tpu.vector_store %arg7[%c5_78, %c1_79, %c0_80], %85 {strides = array<i32>} : memref<8x8x128xf32, #tpu.memory_space<vmem>>, vector<1x1x128xf32>,
    %c0_81 = arith.constant 0 : index
    %c6 = arith.constant 6 : index
    %86 = memref.load %arg0[%c0_81, %c6] : memref<2x8xi32, #tpu.memory_space<smem>>
    %87 = arith.index_cast %86 : i32 to index
    %c0_82 = arith.constant 0 : index
    %c0_83 = arith.constant 0 : index
    %88 = vector.load %arg1[%87, %c0_82, %c0_83] : memref<50x1x128xf32, #tpu.memory_space<vmem>>, vector<1x1x128xf32>
    %89 = vector.shape_cast %88 : vector<1x1x128xf32> to vector<1x128xf32>
    %c6_84 = arith.constant 6 : index
    %c0_85 = arith.constant 0 : index
    %c0_86 = arith.constant 0 : index
    %90 = vector.load %arg7[%c6_84, %c0_85, %c0_86] : memref<8x8x128xf32, #tpu.memory_space<vmem>>, vector<1x1x128xf32>
    %91 = vector.shape_cast %90 : vector<1x1x128xf32> to vector<1x128xf32>
    %92 = vector.shape_cast %89 : vector<1x128xf32> to vector<1x1x128xf32>
    tpu.vector_store %arg7[%c6_84, %c0_85, %c0_86], %92 {strides = array<i32>} : memref<8x8x128xf32, #tpu.memory_space<vmem>>, vector<1x1x128xf32>,
    %c1_87 = arith.constant 1 : index
    %c6_88 = arith.constant 6 : index
    %93 = memref.load %arg0[%c1_87, %c6_88] : memref<2x8xi32, #tpu.memory_space<smem>>
    %94 = arith.index_cast %93 : i32 to index
    %c0_89 = arith.constant 0 : index
    %c0_90 = arith.constant 0 : index
    %95 = vector.load %arg1[%94, %c0_89, %c0_90] : memref<50x1x128xf32, #tpu.memory_space<vmem>>, vector<1x1x128xf32>
    %96 = vector.shape_cast %95 : vector<1x1x128xf32> to vector<1x128xf32>
    %c6_91 = arith.constant 6 : index
    %c1_92 = arith.constant 1 : index
    %c0_93 = arith.constant 0 : index
    %97 = vector.load %arg7[%c6_91, %c1_92, %c0_93] : memref<8x8x128xf32, #tpu.memory_space<vmem>>, vector<1x1x128xf32>
    %98 = vector.shape_cast %97 : vector<1x1x128xf32> to vector<1x128xf32>
    %99 = vector.shape_cast %96 : vector<1x128xf32> to vector<1x1x128xf32>
    tpu.vector_store %arg7[%c6_91, %c1_92, %c0_93], %99 {strides = array<i32>} : memref<8x8x128xf32, #tpu.memory_space<vmem>>, vector<1x1x128xf32>,
    %c0_94 = arith.constant 0 : index
    %c7 = arith.constant 7 : index
    %100 = memref.load %arg0[%c0_94, %c7] : memref<2x8xi32, #tpu.memory_space<smem>>
    %101 = arith.index_cast %100 : i32 to index
    %c0_95 = arith.constant 0 : index
    %c0_96 = arith.constant 0 : index
    %102 = vector.load %arg1[%101, %c0_95, %c0_96] : memref<50x1x128xf32, #tpu.memory_space<vmem>>, vector<1x1x128xf32>
    %103 = vector.shape_cast %102 : vector<1x1x128xf32> to vector<1x128xf32>
    %c7_97 = arith.constant 7 : index
    %c0_98 = arith.constant 0 : index
    %c0_99 = arith.constant 0 : index
    %104 = vector.load %arg7[%c7_97, %c0_98, %c0_99] : memref<8x8x128xf32, #tpu.memory_space<vmem>>, vector<1x1x128xf32>
    %105 = vector.shape_cast %104 : vector<1x1x128xf32> to vector<1x128xf32>
    %106 = vector.shape_cast %103 : vector<1x128xf32> to vector<1x1x128xf32>
    tpu.vector_store %arg7[%c7_97, %c0_98, %c0_99], %106 {strides = array<i32>} : memref<8x8x128xf32, #tpu.memory_space<vmem>>, vector<1x1x128xf32>,
    %c1_100 = arith.constant 1 : index
    %c7_101 = arith.constant 7 : index
    %107 = memref.load %arg0[%c1_100, %c7_101] : memref<2x8xi32, #tpu.memory_space<smem>>
    %108 = arith.index_cast %107 : i32 to index
    %c0_102 = arith.constant 0 : index
    %c0_103 = arith.constant 0 : index
    %109 = vector.load %arg1[%108, %c0_102, %c0_103] : memref<50x1x128xf32, #tpu.memory_space<vmem>>, vector<1x1x128xf32>
    %110 = vector.shape_cast %109 : vector<1x1x128xf32> to vector<1x128xf32>
    %c7_104 = arith.constant 7 : index
    %c1_105 = arith.constant 1 : index
    %c0_106 = arith.constant 0 : index
    %111 = vector.load %arg7[%c7_104, %c1_105, %c0_106] : memref<8x8x128xf32, #tpu.memory_space<vmem>>, vector<1x1x128xf32>
    %112 = vector.shape_cast %111 : vector<1x1x128xf32> to vector<1x128xf32>
    %113 = vector.shape_cast %110 : vector<1x128xf32> to vector<1x1x128xf32>
    tpu.vector_store %arg7[%c7_104, %c1_105, %c0_106], %113 {strides = array<i32>} : memref<8x8x128xf32, #tpu.memory_space<vmem>>, vector<1x1x128xf32>,
    %c0_107 = arith.constant 0 : index
    %c0_108 = arith.constant 0 : index
    %114 = vector.load %arg2[%c0_107, %c0_108] : memref<128x128xbf16, #tpu.memory_space<vmem>>, vector<128x128xbf16>
    %c0_109 = arith.constant 0 : index
    %c0_110 = arith.constant 0 : index
    %115 = vector.load %arg3[%c0_109, %c0_110] : memref<1x128xf32, #tpu.memory_space<vmem>>, vector<1x128xf32>
    %cst_111 = arith.constant 0.000000e+00 : f32
    %116 = vector.broadcast %cst_111 : f32 to vector<8x128xf32>
    %c0_112 = arith.constant 0 : index
    %c0_113 = arith.constant 0 : index
    %c0_114 = arith.constant 0 : index
    %117 = vector.load %arg7[%c0_112, %c0_113, %c0_114] : memref<8x8x128xf32, #tpu.memory_space<vmem>>, vector<1x8x128xf32>
    %118 = vector.shape_cast %117 : vector<1x8x128xf32> to vector<8x128xf32>
    %119 = arith.truncf %116 : vector<8x128xf32> to vector<8x128xbf16>
    %cst_115 = arith.constant dense<0.000000e+00> : vector<8x128xf32>
    %120 = tpu.matmul %119, %114, %cst_115 {dimension_numbers = #tpu.dot_dimension_numbers<[1], [0], [0], [1], [0, 0, 1, 1], [], []>} : vector<8x128xbf16>, vector<128x128xbf16>, vector<8x128xf32> -> vector<8x128xf32>
    %121 = vector.broadcast %115 : vector<1x128xf32> to vector<8x128xf32>
    %122 = arith.addf %120, %121 : vector<8x128xf32>
    %123 = arith.addf %118, %122 : vector<8x128xf32>
    %124 = arith.negf %123 : vector<8x128xf32>
    %125 = math.exp %124 : vector<8x128xf32>
    %cst_116 = arith.constant 1.000000e+00 : f32
    %126 = vector.broadcast %cst_116 : f32 to vector<8x128xf32>
    %127 = arith.addf %126, %125 : vector<8x128xf32>
    %128 = arith.divf %126, %127 : vector<8x128xf32>
    %c64_i32 = arith.constant 64 : i32
    %129 = tpu.dynamic_rotate %128 by %c64_i32 dim 1 : vector<8x128xf32>, i32 -> vector<8x128xf32>
    %c32_i32 = arith.constant 32 : i32
    %130 = tpu.dynamic_rotate %128 by %c32_i32 dim 1 : vector<8x128xf32>, i32 -> vector<8x128xf32>
    %131 = arith.mulf %129, %122 : vector<8x128xf32>
    %132 = arith.addf %118, %131 : vector<8x128xf32>
    %133 = math.tanh %132 : vector<8x128xf32>
    %134 = arith.subf %116, %133 : vector<8x128xf32>
    %135 = arith.mulf %130, %134 : vector<8x128xf32>
    %136 = arith.addf %133, %135 : vector<8x128xf32>
    %c1_117 = arith.constant 1 : index
    %c0_118 = arith.constant 0 : index
    %c0_119 = arith.constant 0 : index
    %137 = vector.load %arg7[%c1_117, %c0_118, %c0_119] : memref<8x8x128xf32, #tpu.memory_space<vmem>>, vector<1x8x128xf32>
    %138 = vector.shape_cast %137 : vector<1x8x128xf32> to vector<8x128xf32>
    %139 = arith.truncf %136 : vector<8x128xf32> to vector<8x128xbf16>
    %cst_120 = arith.constant dense<0.000000e+00> : vector<8x128xf32>
    %140 = tpu.matmul %139, %114, %cst_120 {dimension_numbers = #tpu.dot_dimension_numbers<[1], [0], [0], [1], [0, 0, 1, 1], [], []>} : vector<8x128xbf16>, vector<128x128xbf16>, vector<8x128xf32> -> vector<8x128xf32>
    %141 = vector.broadcast %115 : vector<1x128xf32> to vector<8x128xf32>
    %142 = arith.addf %140, %141 : vector<8x128xf32>
    %143 = arith.addf %138, %142 : vector<8x128xf32>
    %144 = arith.negf %143 : vector<8x128xf32>
    %145 = math.exp %144 : vector<8x128xf32>
    %cst_121 = arith.constant 1.000000e+00 : f32
    %146 = vector.broadcast %cst_121 : f32 to vector<8x128xf32>
    %147 = arith.addf %146, %145 : vector<8x128xf32>
    %148 = arith.divf %146, %147 : vector<8x128xf32>
    %c64_i32_122 = arith.constant 64 : i32
    %149 = tpu.dynamic_rotate %148 by %c64_i32_122 dim 1 : vector<8x128xf32>, i32 -> vector<8x128xf32>
    %c32_i32_123 = arith.constant 32 : i32
    %150 = tpu.dynamic_rotate %148 by %c32_i32_123 dim 1 : vector<8x128xf32>, i32 -> vector<8x128xf32>
    %151 = arith.mulf %149, %142 : vector<8x128xf32>
    %152 = arith.addf %138, %151 : vector<8x128xf32>
    %153 = math.tanh %152 : vector<8x128xf32>
    %154 = arith.subf %136, %153 : vector<8x128xf32>
    %155 = arith.mulf %150, %154 : vector<8x128xf32>
    %156 = arith.addf %153, %155 : vector<8x128xf32>
    %c2_124 = arith.constant 2 : index
    %c0_125 = arith.constant 0 : index
    %c0_126 = arith.constant 0 : index
    %157 = vector.load %arg7[%c2_124, %c0_125, %c0_126] : memref<8x8x128xf32, #tpu.memory_space<vmem>>, vector<1x8x128xf32>
    %158 = vector.shape_cast %157 : vector<1x8x128xf32> to vector<8x128xf32>
    %159 = arith.truncf %156 : vector<8x128xf32> to vector<8x128xbf16>
    %cst_127 = arith.constant dense<0.000000e+00> : vector<8x128xf32>
    %160 = tpu.matmul %159, %114, %cst_127 {dimension_numbers = #tpu.dot_dimension_numbers<[1], [0], [0], [1], [0, 0, 1, 1], [], []>} : vector<8x128xbf16>, vector<128x128xbf16>, vector<8x128xf32> -> vector<8x128xf32>
    %161 = vector.broadcast %115 : vector<1x128xf32> to vector<8x128xf32>
    %162 = arith.addf %160, %161 : vector<8x128xf32>
    %163 = arith.addf %158, %162 : vector<8x128xf32>
    %164 = arith.negf %163 : vector<8x128xf32>
    %165 = math.exp %164 : vector<8x128xf32>
    %cst_128 = arith.constant 1.000000e+00 : f32
    %166 = vector.broadcast %cst_128 : f32 to vector<8x128xf32>
    %167 = arith.addf %166, %165 : vector<8x128xf32>
    %168 = arith.divf %166, %167 : vector<8x128xf32>
    %c64_i32_129 = arith.constant 64 : i32
    %169 = tpu.dynamic_rotate %168 by %c64_i32_129 dim 1 : vector<8x128xf32>, i32 -> vector<8x128xf32>
    %c32_i32_130 = arith.constant 32 : i32
    %170 = tpu.dynamic_rotate %168 by %c32_i32_130 dim 1 : vector<8x128xf32>, i32 -> vector<8x128xf32>
    %171 = arith.mulf %169, %162 : vector<8x128xf32>
    %172 = arith.addf %158, %171 : vector<8x128xf32>
    %173 = math.tanh %172 : vector<8x128xf32>
    %174 = arith.subf %156, %173 : vector<8x128xf32>
    %175 = arith.mulf %170, %174 : vector<8x128xf32>
    %176 = arith.addf %173, %175 : vector<8x128xf32>
    %c3_131 = arith.constant 3 : index
    %c0_132 = arith.constant 0 : index
    %c0_133 = arith.constant 0 : index
    %177 = vector.load %arg7[%c3_131, %c0_132, %c0_133] : memref<8x8x128xf32, #tpu.memory_space<vmem>>, vector<1x8x128xf32>
    %178 = vector.shape_cast %177 : vector<1x8x128xf32> to vector<8x128xf32>
    %179 = arith.truncf %176 : vector<8x128xf32> to vector<8x128xbf16>
    %cst_134 = arith.constant dense<0.000000e+00> : vector<8x128xf32>
    %180 = tpu.matmul %179, %114, %cst_134 {dimension_numbers = #tpu.dot_dimension_numbers<[1], [0], [0], [1], [0, 0, 1, 1], [], []>} : vector<8x128xbf16>, vector<128x128xbf16>, vector<8x128xf32> -> vector<8x128xf32>
    %181 = vector.broadcast %115 : vector<1x128xf32> to vector<8x128xf32>
    %182 = arith.addf %180, %181 : vector<8x128xf32>
    %183 = arith.addf %178, %182 : vector<8x128xf32>
    %184 = arith.negf %183 : vector<8x128xf32>
    %185 = math.exp %184 : vector<8x128xf32>
    %cst_135 = arith.constant 1.000000e+00 : f32
    %186 = vector.broadcast %cst_135 : f32 to vector<8x128xf32>
    %187 = arith.addf %186, %185 : vector<8x128xf32>
    %188 = arith.divf %186, %187 : vector<8x128xf32>
    %c64_i32_136 = arith.constant 64 : i32
    %189 = tpu.dynamic_rotate %188 by %c64_i32_136 dim 1 : vector<8x128xf32>, i32 -> vector<8x128xf32>
    %c32_i32_137 = arith.constant 32 : i32
    %190 = tpu.dynamic_rotate %188 by %c32_i32_137 dim 1 : vector<8x128xf32>, i32 -> vector<8x128xf32>
    %191 = arith.mulf %189, %182 : vector<8x128xf32>
    %192 = arith.addf %178, %191 : vector<8x128xf32>
    %193 = math.tanh %192 : vector<8x128xf32>
    %194 = arith.subf %176, %193 : vector<8x128xf32>
    %195 = arith.mulf %190, %194 : vector<8x128xf32>
    %196 = arith.addf %193, %195 : vector<8x128xf32>
    %c4_138 = arith.constant 4 : index
    %c0_139 = arith.constant 0 : index
    %c0_140 = arith.constant 0 : index
    %197 = vector.load %arg7[%c4_138, %c0_139, %c0_140] : memref<8x8x128xf32, #tpu.memory_space<vmem>>, vector<1x8x128xf32>
    %198 = vector.shape_cast %197 : vector<1x8x128xf32> to vector<8x128xf32>
    %199 = arith.truncf %196 : vector<8x128xf32> to vector<8x128xbf16>
    %cst_141 = arith.constant dense<0.000000e+00> : vector<8x128xf32>
    %200 = tpu.matmul %199, %114, %cst_141 {dimension_numbers = #tpu.dot_dimension_numbers<[1], [0], [0], [1], [0, 0, 1, 1], [], []>} : vector<8x128xbf16>, vector<128x128xbf16>, vector<8x128xf32> -> vector<8x128xf32>
    %201 = vector.broadcast %115 : vector<1x128xf32> to vector<8x128xf32>
    %202 = arith.addf %200, %201 : vector<8x128xf32>
    %203 = arith.addf %198, %202 : vector<8x128xf32>
    %204 = arith.negf %203 : vector<8x128xf32>
    %205 = math.exp %204 : vector<8x128xf32>
    %cst_142 = arith.constant 1.000000e+00 : f32
    %206 = vector.broadcast %cst_142 : f32 to vector<8x128xf32>
    %207 = arith.addf %206, %205 : vector<8x128xf32>
    %208 = arith.divf %206, %207 : vector<8x128xf32>
    %c64_i32_143 = arith.constant 64 : i32
    %209 = tpu.dynamic_rotate %208 by %c64_i32_143 dim 1 : vector<8x128xf32>, i32 -> vector<8x128xf32>
    %c32_i32_144 = arith.constant 32 : i32
    %210 = tpu.dynamic_rotate %208 by %c32_i32_144 dim 1 : vector<8x128xf32>, i32 -> vector<8x128xf32>
    %211 = arith.mulf %209, %202 : vector<8x128xf32>
    %212 = arith.addf %198, %211 : vector<8x128xf32>
    %213 = math.tanh %212 : vector<8x128xf32>
    %214 = arith.subf %196, %213 : vector<8x128xf32>
    %215 = arith.mulf %210, %214 : vector<8x128xf32>
    %216 = arith.addf %213, %215 : vector<8x128xf32>
    %c5_145 = arith.constant 5 : index
    %c0_146 = arith.constant 0 : index
    %c0_147 = arith.constant 0 : index
    %217 = vector.load %arg7[%c5_145, %c0_146, %c0_147] : memref<8x8x128xf32, #tpu.memory_space<vmem>>, vector<1x8x128xf32>
    %218 = vector.shape_cast %217 : vector<1x8x128xf32> to vector<8x128xf32>
    %219 = arith.truncf %216 : vector<8x128xf32> to vector<8x128xbf16>
    %cst_148 = arith.constant dense<0.000000e+00> : vector<8x128xf32>
    %220 = tpu.matmul %219, %114, %cst_148 {dimension_numbers = #tpu.dot_dimension_numbers<[1], [0], [0], [1], [0, 0, 1, 1], [], []>} : vector<8x128xbf16>, vector<128x128xbf16>, vector<8x128xf32> -> vector<8x128xf32>
    %221 = vector.broadcast %115 : vector<1x128xf32> to vector<8x128xf32>
    %222 = arith.addf %220, %221 : vector<8x128xf32>
    %223 = arith.addf %218, %222 : vector<8x128xf32>
    %224 = arith.negf %223 : vector<8x128xf32>
    %225 = math.exp %224 : vector<8x128xf32>
    %cst_149 = arith.constant 1.000000e+00 : f32
    %226 = vector.broadcast %cst_149 : f32 to vector<8x128xf32>
    %227 = arith.addf %226, %225 : vector<8x128xf32>
    %228 = arith.divf %226, %227 : vector<8x128xf32>
    %c64_i32_150 = arith.constant 64 : i32
    %229 = tpu.dynamic_rotate %228 by %c64_i32_150 dim 1 : vector<8x128xf32>, i32 -> vector<8x128xf32>
    %c32_i32_151 = arith.constant 32 : i32
    %230 = tpu.dynamic_rotate %228 by %c32_i32_151 dim 1 : vector<8x128xf32>, i32 -> vector<8x128xf32>
    %231 = arith.mulf %229, %222 : vector<8x128xf32>
    %232 = arith.addf %218, %231 : vector<8x128xf32>
    %233 = math.tanh %232 : vector<8x128xf32>
    %234 = arith.subf %216, %233 : vector<8x128xf32>
    %235 = arith.mulf %230, %234 : vector<8x128xf32>
    %236 = arith.addf %233, %235 : vector<8x128xf32>
    %c6_152 = arith.constant 6 : index
    %c0_153 = arith.constant 0 : index
    %c0_154 = arith.constant 0 : index
    %237 = vector.load %arg7[%c6_152, %c0_153, %c0_154] : memref<8x8x128xf32, #tpu.memory_space<vmem>>, vector<1x8x128xf32>
    %238 = vector.shape_cast %237 : vector<1x8x128xf32> to vector<8x128xf32>
    %239 = arith.truncf %236 : vector<8x128xf32> to vector<8x128xbf16>
    %cst_155 = arith.constant dense<0.000000e+00> : vector<8x128xf32>
    %240 = tpu.matmul %239, %114, %cst_155 {dimension_numbers = #tpu.dot_dimension_numbers<[1], [0], [0], [1], [0, 0, 1, 1], [], []>} : vector<8x128xbf16>, vector<128x128xbf16>, vector<8x128xf32> -> vector<8x128xf32>
    %241 = vector.broadcast %115 : vector<1x128xf32> to vector<8x128xf32>
    %242 = arith.addf %240, %241 : vector<8x128xf32>
    %243 = arith.addf %238, %242 : vector<8x128xf32>
    %244 = arith.negf %243 : vector<8x128xf32>
    %245 = math.exp %244 : vector<8x128xf32>
    %cst_156 = arith.constant 1.000000e+00 : f32
    %246 = vector.broadcast %cst_156 : f32 to vector<8x128xf32>
    %247 = arith.addf %246, %245 : vector<8x128xf32>
    %248 = arith.divf %246, %247 : vector<8x128xf32>
    %c64_i32_157 = arith.constant 64 : i32
    %249 = tpu.dynamic_rotate %248 by %c64_i32_157 dim 1 : vector<8x128xf32>, i32 -> vector<8x128xf32>
    %c32_i32_158 = arith.constant 32 : i32
    %250 = tpu.dynamic_rotate %248 by %c32_i32_158 dim 1 : vector<8x128xf32>, i32 -> vector<8x128xf32>
    %251 = arith.mulf %249, %242 : vector<8x128xf32>
    %252 = arith.addf %238, %251 : vector<8x128xf32>
    %253 = math.tanh %252 : vector<8x128xf32>
    %254 = arith.subf %236, %253 : vector<8x128xf32>
    %255 = arith.mulf %250, %254 : vector<8x128xf32>
    %256 = arith.addf %253, %255 : vector<8x128xf32>
    %c7_159 = arith.constant 7 : index
    %c0_160 = arith.constant 0 : index
    %c0_161 = arith.constant 0 : index
    %257 = vector.load %arg7[%c7_159, %c0_160, %c0_161] : memref<8x8x128xf32, #tpu.memory_space<vmem>>, vector<1x8x128xf32>
    %258 = vector.shape_cast %257 : vector<1x8x128xf32> to vector<8x128xf32>
    %259 = arith.truncf %256 : vector<8x128xf32> to vector<8x128xbf16>
    %cst_162 = arith.constant dense<0.000000e+00> : vector<8x128xf32>
    %260 = tpu.matmul %259, %114, %cst_162 {dimension_numbers = #tpu.dot_dimension_numbers<[1], [0], [0], [1], [0, 0, 1, 1], [], []>} : vector<8x128xbf16>, vector<128x128xbf16>, vector<8x128xf32> -> vector<8x128xf32>
    %261 = vector.broadcast %115 : vector<1x128xf32> to vector<8x128xf32>
    %262 = arith.addf %260, %261 : vector<8x128xf32>
    %263 = arith.addf %258, %262 : vector<8x128xf32>
    %264 = arith.negf %263 : vector<8x128xf32>
    %265 = math.exp %264 : vector<8x128xf32>
    %cst_163 = arith.constant 1.000000e+00 : f32
    %266 = vector.broadcast %cst_163 : f32 to vector<8x128xf32>
    %267 = arith.addf %266, %265 : vector<8x128xf32>
    %268 = arith.divf %266, %267 : vector<8x128xf32>
    %c64_i32_164 = arith.constant 64 : i32
    %269 = tpu.dynamic_rotate %268 by %c64_i32_164 dim 1 : vector<8x128xf32>, i32 -> vector<8x128xf32>
    %c32_i32_165 = arith.constant 32 : i32
    %270 = tpu.dynamic_rotate %268 by %c32_i32_165 dim 1 : vector<8x128xf32>, i32 -> vector<8x128xf32>
    %271 = arith.mulf %269, %262 : vector<8x128xf32>
    %272 = arith.addf %258, %271 : vector<8x128xf32>
    %273 = math.tanh %272 : vector<8x128xf32>
    %274 = arith.subf %256, %273 : vector<8x128xf32>
    %275 = arith.mulf %270, %274 : vector<8x128xf32>
    %276 = arith.addf %273, %275 : vector<8x128xf32>
    %277 = arith.truncf %276 : vector<8x128xf32> to vector<8x128xbf16>
    %c0_166 = arith.constant 0 : index
    %c0_167 = arith.constant 0 : index
    %278 = vector.load %arg4[%c0_166, %c0_167] : memref<128x128xbf16, #tpu.memory_space<vmem>>, vector<128x128xbf16>
    %cst_168 = arith.constant dense<0.000000e+00> : vector<8x128xf32>
    %279 = tpu.matmul %277, %278, %cst_168 {dimension_numbers = #tpu.dot_dimension_numbers<[1], [0], [0], [1], [0, 0, 1, 1], [], []>} : vector<8x128xbf16>, vector<128x128xbf16>, vector<8x128xf32> -> vector<8x128xf32>
    %c0_169 = arith.constant 0 : index
    %c0_170 = arith.constant 0 : index
    %280 = vector.load %arg5[%c0_169, %c0_170] : memref<1x128xf32, #tpu.memory_space<vmem>>, vector<1x128xf32>
    %281 = vector.broadcast %280 : vector<1x128xf32> to vector<8x128xf32>
    %282 = arith.addf %279, %281 : vector<8x128xf32>
    %c0_171 = arith.constant 0 : index
    %c0_172 = arith.constant 0 : index
    %283 = vector.load %arg6[%c0_171, %c0_172] : memref<8x128xf32, #tpu.memory_space<vmem>>, vector<8x128xf32>
    tpu.vector_store %arg6[%c0_171, %c0_172], %282 {strides = array<i32>} : memref<8x128xf32, #tpu.memory_space<vmem>>, vector<8x128xf32>,
    return
  }
}

</mosaic_0001>

<bundles_post_ra>
// kernel: tpu_custom_call.1
= control target key start
LH: loop header
LB: loop body
LE: loop exit
PB: predicated region body
PF: predicated region fallthrough
CT: control target
= control target key end

     0   :  { %11 = vsyncpa [#allocation6], 0  ;;  %s1088_s0 = inlined_call_operand.hbm [shape: s32[2,8], index: 0, kind: input, shape index: {}]   ;;  %s1089_s1 = inlined_call_operand.hbm [shape: f32[50,1,128], index: 1, kind: input, shape index: {}]   ;;  %s1090_s2 = inlined_call_operand.hbm [shape: bf16[128,128], index: 2, kind: input, shape index: {}]   ;;  %s1091_s3 = inlined_call_operand.vmem [shape: f32[1,128], index: 3, kind: input, shape index: {}]   ;;  %s1092_s4 = inlined_call_operand.hbm [shape: bf16[128,128], index: 4, kind: input, shape index: {}]   ;;  %s1093_s5 = inlined_call_operand.vmem [shape: f32[1,128], index: 5, kind: input, shape index: {}]   ;;  %s1094_s6 = inlined_call_operand.hbm [shape: f32[8,128], index: 6, kind: output, shape index: {}]  }
   0x1   :  { %12 = vsyncpa [#allocation4], 0 }
   0x2   :  { %13 = vsyncpa [#allocation9], 0  ;;  %s41_s23 = sshll.u32 %s1090_s2, 4  ;;  %s42_s23 = int_to_ptr.hbm [resolvable:$true] %s41_s23 }
   0x3   :  { %14 = vsyncpa [#allocation5], 0  ;;  %s990_s24 = smov [#allocation8]   ;;  %s20_s28 = sshll.u32 %s1088_s0, 4  ;;  %s21_s28 = int_to_ptr.hbm [resolvable:$true] %s20_s28 }
   0x4   :  { %s43_s25 = sshll.u32 %s990_s24, 4  ;;  %s991_s29 = smov 64   ;;  %s44_s25 = int_to_ptr.vmem [resolvable:$true] %s43_s25 }
   0x5   :  { %s992_s30 = smov 4   ;;  %s993_s7 = smov [#allocation3]  }
   0x6   :  { %49 = dma.hbm_to_vmem [thread:$0]  %s42_s23, 1024, %s44_s25, [#allocation9], %s991_s29, %s991_s29, %s992_s30  }
   0x7   :  { %23 = dma.hbm_to_smem %s21_s28, 32, %s993_s7, [#allocation6]  }
   0x8   :  { %s28_s2 = sshll.u32 %s1089_s1, 4  ;;  %s994_s10 = smov [#allocation7]   ;;  %s29_s2 = int_to_ptr.hbm [resolvable:$true] %s28_s2 }
   0x9   :  { %s30_s11 = sshll.u32 %s994_s10, 4  ;;  %s56_s0 = sshll.u32 %s1092_s4, 4  ;;  %s31_s11 = int_to_ptr.vmem [resolvable:$true] %s30_s11  ;;  %s57_s0 = int_to_ptr.hbm [resolvable:$true] %s56_s0 }
   0xa   :  { %s995_s14 = smov 16   ;;  %s996_s15 = smov 1  }
   0xb   :  { %36 = dma.hbm_to_vmem [thread:$0]  %s29_s2, 800, %s31_s11, [#allocation4], %s995_s14, %s995_s14, %s996_s15  }
   0xc   :  { %s997_s16 = smov [#allocation10]  }
   0xd   :  { %s58_s17 = sshll.u32 %s997_s16, 4  ;;  %s59_s17 = int_to_ptr.vmem [resolvable:$true] %s58_s17 }
   0xe   :  { %64 = dma.hbm_to_vmem [thread:$0]  %s57_s0, 1024, %s59_s17, [#allocation9], %s991_s29, %s991_s29, %s992_s30  }
   0xf   :  { %982 = dma.done.wait [#allocation6], 32  }
  0x10   :  { %983 = vsyncadd [#allocation6], 4294967264 }
  0x11   :  { %984 = dma.done.wait [#allocation4], 800  }
  0x12   :  { %985 = vsyncadd [#allocation4], 4294966496 }
  0x13   :  { %986 = dma.done.wait [#allocation9], 2048  }
  0x14   :  { %987 = vsyncadd [#allocation9], 4294965248 }
  0x15   :  { %83 = sfence }
  0x16   :  { %v803_v0 = vld [vmem:[#allocation8 + $0x38] sm:$0xff]  ;;  %s93_s1 = sld [smem:[#allocation3]]  ;;  %v802_v1 = vld [vmem:[#allocation8 + $0x30] sm:$0xff]  ;;  %v998_v2 = vmov 0.0   ;;  %v801_v3 = vld [vmem:[#allocation8 + $0x28] sm:$0xff]  ;;  %v999_v11 = vmov 0  }
  0x17   :  { %s709_s4 = sld [smem:[#allocation3 + $0x80]]  ;;  %233 = vmatpush.bf16.msra.mxu0 %v803_v0  ;;  %85 = vst [vmem:[#allocation2] sm:$0xff] %v998_v2  ;;  %278 = vmatpush.bf16.msra.mxu1 %v803_v0  ;;  %v800_v6 = vld [vmem:[#allocation8 + $0x20] sm:$0xff]  ;;  %v799_v7 = vld [vmem:[#allocation8 + $0x18] sm:$0xff]  ;;  %v798_v8 = vld [vmem:[#allocation8 + $0x10] sm:$0xff] }
  0x18   :  { %86 = vst [vmem:[#allocation2 + $0x8] sm:$0xff] %v998_v2  ;;  %323 = vmatpush.bf16.msra.mxu2 %v803_v0  ;;  %368 = vmatpush.bf16.msra.mxu3 %v803_v0  ;;  %v797_v9 = vld [vmem:[#allocation8 + $0x8] sm:$0xff]  ;;  %v796_v10 = vld [vmem:[#allocation8] sm:$0xff]  ;;  %s710_s22 = sld [smem:[#allocation3 + $0x1]] }
  0x19   :  { %87 = vst [vmem:[#allocation2 + $0x10] sm:$0xff] %v998_v2  ;;  %v1056_v12 = vld [vmem:[%s1091_s3] ss:$0 sm:$0xff]  ;;  %s1000_s3 = smov 32   ;;  %s711_s23 = sld [smem:[#allocation3 + $0x81]] }
  0x1a   :  { %88 = vst [vmem:[#allocation2 + $0x18] sm:$0xff] %v998_v2  ;;  %s712_s26 = sld [smem:[#allocation3 + $0x2]] }
  0x1b   :  { %234 = vmatpush.bf16.msra.mxu0 %v802_v1  ;;  %89 = vst [vmem:[#allocation2 + $0x20] sm:$0xff] %v998_v2  ;;  %279 = vmatpush.bf16.msra.mxu1 %v802_v1  ;;  %s713_s27 = sld [smem:[#allocation3 + $0x82]] }
  0x1c   :  { %s94_s18 = scalar_lea.vmem [#allocation7], %s93_s1  ;;  %90 = vst [vmem:[#allocation2 + $0x28] sm:$0xff] %v998_v2  ;;  %324 = vmatpush.bf16.msra.mxu2 %v802_v1  ;;  %369 = vmatpush.bf16.msra.mxu3 %v802_v1  ;;  %s714_s7 = sld [smem:[#allocation3 + $0x3]] }
  0x1d   :  { %v95_v4 = vld [vmem:[%s94_s18] sm:$0x1]  ;;  %s98_s19 = scalar_lea.vmem [#allocation7], %s709_s4  ;;  %91 = vst [vmem:[#allocation2 + $0x30] sm:$0xff] %v998_v2  ;;  %s715_s8 = sld [smem:[#allocation3 + $0x83]] }
  0x1e   :  { %96 = vst [vmem:[#allocation2] sm:$0x1] %v95_v4  ;;  %v99_v5 = vld [vmem:[%s98_s19] sm:$0x1]  ;;  %s102_s24 = scalar_lea.vmem [#allocation7], %s710_s22  ;;  %s716_s10 = sld [smem:[#allocation3 + $0x4]] }
  0x1f   :  { %100 = vst [vmem:[#allocation2 + $0x1] sm:$0x1] %v99_v5  ;;  %235 = vmatpush.bf16.msra.mxu0 %v801_v3  ;;  %280 = vmatpush.bf16.msra.mxu1 %v801_v3  ;;  %v103_v31 = vld [vmem:[%s102_s24] sm:$0x1]  ;;  %s107_s25 = scalar_lea.vmem [#allocation7], %s711_s23  ;;  %s717_s11 = sld [smem:[#allocation3 + $0x84]] }
  0x20   :  { %92 = vst [vmem:[#allocation2 + $0x38] sm:$0xff] %v998_v2  ;;  %325 = vmatpush.bf16.msra.mxu2 %v801_v3  ;;  %370 = vmatpush.bf16.msra.mxu3 %v801_v3  ;;  %v108_v32 = vld [vmem:[%s107_s25] sm:$0x1]  ;;  %s111_s28 = scalar_lea.vmem [#allocation7], %s712_s26  ;;  %s718_s0 = sld [smem:[#allocation3 + $0x5]] }
  0x21   :  { %105 = vst [vmem:[#allocation2 + $0x8] sm:$0x1] %v103_v31  ;;  %v112_v60 = vld [vmem:[%s111_s28] sm:$0x1]  ;;  %s116_s30 = scalar_lea.vmem [#allocation7], %s713_s27  ;;  %s719_s14 = sld [smem:[#allocation3 + $0x85]] }
  0x22   :  { %109 = vst [vmem:[#allocation2 + $0x9] sm:$0x1] %v108_v32  ;;  %v117_v61 = vld [vmem:[%s116_s30] sm:$0x1]  ;;  %s120_s9 = scalar_lea.vmem [#allocation7], %s714_s7  ;;  %s720_s17 = sld [smem:[#allocation3 + $0x6]] }
  0x23   :  { %236 = vmatpush.bf16.msra.mxu0 %v800_v6  ;;  %281 = vmatpush.bf16.msra.mxu1 %v800_v6  ;;  %114 = vst [vmem:[#allocation2 + $0x10] sm:$0x1] %v112_v60  ;;  %s125_s2 = scalar_lea.vmem [#allocation7], %s715_s8  ;;  %s721_s1 = sld [smem:[#allocation3 + $0x86]] }
  0x24   :  { %326 = vmatpush.bf16.msra.mxu2 %v800_v6  ;;  %371 = vmatpush.bf16.msra.mxu3 %v800_v6  ;;  %118 = vst [vmem:[#allocation2 + $0x11] sm:$0x1] %v117_v61  ;;  %s129_s12 = scalar_lea.vmem [#allocation7], %s716_s10  ;;  %s722_s19 = sld [smem:[#allocation3 + $0x7]] }
  0x25   :  { %s134_s13 = scalar_lea.vmem [#allocation7], %s717_s11  ;;  %s723_s20 = sld [smem:[#allocation3 + $0x87]] }
  0x26   :  { %v181_v13 = vld [vmem:[#allocation2] sm:$0xff]  ;;  %s138_s15 = scalar_lea.vmem [#allocation7], %s718_s0  ;;  %s1001_s23 = smov [#allocation11]  }
  0x27   :  { %237 = vmatpush.bf16.msra.mxu0 %v799_v7  ;;  %282 = vmatpush.bf16.msra.mxu1 %v799_v7  ;;  %s143_s16 = scalar_lea.vmem [#allocation7], %s719_s14  ;;  %s679_s24 = sshll.u32 %s1001_s23, 4  ;;  %s680_s24 = int_to_ptr.vmem [resolvable:$true] %s679_s24 }
  0x28   :  { %327 = vmatpush.bf16.msra.mxu2 %v799_v7  ;;  %372 = vmatpush.bf16.msra.mxu3 %v799_v7  ;;  %s147_s4 = scalar_lea.vmem [#allocation7], %s720_s17  ;;  %s681_s27 = sshll.u32 %s1094_s6, 4  ;;  %s682_s27 = int_to_ptr.hbm [resolvable:$true] %s681_s27 }
  0x29   :  { %v276_v42 = vld [vmem:[#allocation2 + $0x8] sm:$0xff]  ;;  %s152_s18 = scalar_lea.vmem [#allocation7], %s721_s1 }
  0x2a   :  { %s156_s21 = scalar_lea.vmem [#allocation7], %s722_s19 }
  0x2b   :  { %238 = vmatpush.bf16.msra.mxu0 %v798_v8  ;;  %283 = vmatpush.bf16.msra.mxu1 %v798_v8  ;;  %s161_s22 = scalar_lea.vmem [#allocation7], %s723_s20 }
  0x2c   :  { %328 = vmatpush.bf16.msra.mxu2 %v798_v8  ;;  %373 = vmatpush.bf16.msra.mxu3 %v798_v8 }
  0x2f   :  { %239 = vmatpush.bf16.msra.mxu0 %v797_v9  ;;  %284 = vmatpush.bf16.msra.mxu1 %v797_v9 }
  0x30   :  { %329 = vmatpush.bf16.msra.mxu2 %v797_v9  ;;  %374 = vmatpush.bf16.msra.mxu3 %v797_v9 }
  0x33   :  { %240 = vmatpush.bf16.msra.mxu0 %v796_v10  ;;  %285 = vmatpush.bf16.msra.mxu1 %v796_v10 }
  0x34   :  { %330 = vmatpush.bf16.msra.mxu2 %v796_v10  ;;  %375 = vmatpush.bf16.msra.mxu3 %v796_v10 }
  0x36   :  { %241 = vmatmul.bf16.vlgmr.msra.gmra.mxu0 %v999_v11 }
  0x37   :  { %413 = vmatpush.bf16.msrb.mxu0 %v803_v0  ;;  %458 = vmatpush.bf16.msrb.mxu1 %v803_v0 }
  0x38   :  { %503 = vmatpush.bf16.msrb.mxu2 %v803_v0  ;;  %548 = vmatpush.bf16.msrb.mxu3 %v803_v0 }
  0x3b   :  { %414 = vmatpush.bf16.msrb.mxu0 %v802_v1  ;;  %459 = vmatpush.bf16.msrb.mxu1 %v802_v1 }
  0x3c   :  { %504 = vmatpush.bf16.msrb.mxu2 %v802_v1  ;;  %549 = vmatpush.bf16.msrb.mxu3 %v802_v1 }
  0x3f   :  { %415 = vmatpush.bf16.msrb.mxu0 %v801_v3  ;;  %460 = vmatpush.bf16.msrb.mxu1 %v801_v3 }
  0x40   :  { %505 = vmatpush.bf16.msrb.mxu2 %v801_v3  ;;  %550 = vmatpush.bf16.msrb.mxu3 %v801_v3 }
  0x43   :  { %416 = vmatpush.bf16.msrb.mxu0 %v800_v6  ;;  %461 = vmatpush.bf16.msrb.mxu1 %v800_v6 }
  0x44   :  { %506 = vmatpush.bf16.msrb.mxu2 %v800_v6  ;;  %551 = vmatpush.bf16.msrb.mxu3 %v800_v6 }
  0x47   :  { %417 = vmatpush.bf16.msrb.mxu0 %v799_v7  ;;  %462 = vmatpush.bf16.msrb.mxu1 %v799_v7 }
  0x48   :  { %507 = vmatpush.bf16.msrb.mxu2 %v799_v7  ;;  %552 = vmatpush.bf16.msrb.mxu3 %v799_v7  ;;  %v321_v7 = vld [vmem:[#allocation2 + $0x10] sm:$0xff] }
  0x4b   :  { %418 = vmatpush.bf16.msrb.mxu0 %v798_v8  ;;  %463 = vmatpush.bf16.msrb.mxu1 %v798_v8 }
  0x4c   :  { %508 = vmatpush.bf16.msrb.mxu2 %v798_v8  ;;  %553 = vmatpush.bf16.msrb.mxu3 %v798_v8 }
  0x4f   :  { %419 = vmatpush.bf16.msrb.mxu0 %v797_v9  ;;  %464 = vmatpush.bf16.msrb.mxu1 %v797_v9 }
  0x50   :  { %509 = vmatpush.bf16.msrb.mxu2 %v797_v9  ;;  %554 = vmatpush.bf16.msrb.mxu3 %v797_v9 }
  0x53   :  { %420 = vmatpush.bf16.msrb.mxu0 %v796_v10  ;;  %465 = vmatpush.bf16.msrb.mxu1 %v796_v10 }
  0x54   :  { %510 = vmatpush.bf16.msrb.mxu2 %v796_v10  ;;  %555 = vmatpush.bf16.msrb.mxu3 %v796_v10 }
  0xb3   :  { %v242_v14 = vpop.f32.mrf.mxu0 }
  0xb4   :  { %v243_v15 = vadd.f32 %v1056_v12, %v242_v14 }
  0xb6   :  { %v246_v16 = vadd.f32 %v243_v15, %v181_v13 }
  0xb8   :  { %v756_v17 = vmul.f32 -1.442695, %v246_v16 }
  0xba   :  { %826 = vpow2.f32 %v756_v17 }
  0xbb   :  { %v244_v18 = vpop.f32.mrf.mxu0 }
  0xc0   :  { %v827_v19 = vpop.eup %826 }
  0xc1   :  { %v250_v20 = vadd.f32 1.0, %v827_v19 }
  0xc3   :  { %828 = vrcp.f32 %v250_v20  ;;  %v262_v24 = vand.u32 2147483648, %v250_v20  ;;  %v260_v26 = vand.u32 2147483647, %v250_v20  ;;  %vm256_vm1 = vweird.f32 %v250_v20 }
  0xc5   :  { %v263_v28 = vor.u32 1.1754944e-38, %v262_v24  ;;  %vm261_vm3 = vcmp.eq.f32.partialorder %v260_v26, 8.507059e+37  ;;  %v121_v26 = vld [vmem:[%s120_s9] sm:$0x1] }
  0xc6   :  { %123 = vst [vmem:[#allocation2 + $0x18] sm:$0x1] %v121_v26 }
  0xc9   :  { %v829_v21 = vpop.eup %828 }
  0xca   :  { %v252_v22 = vmul.f32 %v829_v21, %v250_v20  ;;  %vm257_vm0 = vweird.f32 %v829_v21 }
  0xcb   :  { %vm258_vm2 = vmor %vm256_vm1, %vm257_vm0 }
  0xcc   :  { %v253_v23 = vsub.f32 1.0, %v252_v22 }
  0xce   :  { %v254_v25 = vmul.f32 %v829_v21, %v253_v23 }
  0xd0   :  { %v255_v27 = vadd.f32 %v829_v21, %v254_v25 }
  0xd2   :  { %v259_v29 = vsel %vm258_vm2, %v829_v21, %v255_v27  ;;  %v126_v27 = vld [vmem:[%s125_s2] sm:$0x1] }
  0xd3   :  { %v264_v30 = vsel %vm261_vm3, %v263_v28, %v259_v29  ;;  %127 = vst [vmem:[#allocation2 + $0x19] sm:$0x1] %v126_v27 }
  0xd4   :  { %266 = vrot.lane.b32.xlu0 %v264_v30, %s991_s29 }
  0xdc   :  { %268 = vrot.lane.b32.xlu0 %v264_v30, %s1000_s3 }
 0x146   :  { %v267_v33 = vpop.permute.xlu0 %266 }
 0x147   :  { %v270_v34 = vmul.f32 %v267_v33, %v243_v15 }
 0x149   :  { %v271_v35 = vadd.f32 %v270_v34, %v181_v13 }
 0x14b   :  { %830 = vtanh.f32 %v271_v35 }
 0x14e   :  { %v269_v38 = vpop.permute.xlu0 %268 }
 0x151   :  { %v831_v36 = vpop.eup %830 }
 0x152   :  { %v273_v37 = vsub.f32 0.0, %v831_v36 }
 0x154   :  { %v274_v39 = vmul.f32 %v273_v37, %v269_v38  ;;  %v366_v37 = vld [vmem:[#allocation2 + $0x18] sm:$0xff] }
 0x156   :  { %v275_v40 = vadd.f32 %v831_v36, %v274_v39 }
 0x158   :  { %v277_v41 = vpack.c.bf16 %v275_v40, %v275_v40 }
 0x15a   :  { %286 = vmatmul.bf16.vlgmr.msra.gmra.mxu1 %v277_v41 }
 0x1d7   :  { %v287_v43 = vpop.f32.mrf.mxu1 }
 0x1d8   :  { %v288_v44 = vadd.f32 %v1056_v12, %v287_v43 }
 0x1da   :  { %v291_v45 = vadd.f32 %v288_v44, %v276_v42 }
 0x1dc   :  { %v757_v46 = vmul.f32 -1.442695, %v291_v45 }
 0x1de   :  { %832 = vpow2.f32 %v757_v46 }
 0x1df   :  { %v289_v47 = vpop.f32.mrf.mxu1 }
 0x1e4   :  { %v833_v48 = vpop.eup %832 }
 0x1e5   :  { %v295_v49 = vadd.f32 1.0, %v833_v48 }
 0x1e7   :  { %834 = vrcp.f32 %v295_v49  ;;  %v307_v53 = vand.u32 2147483648, %v295_v49  ;;  %v305_v55 = vand.u32 2147483647, %v295_v49  ;;  %vm301_vm5 = vweird.f32 %v295_v49 }
 0x1e9   :  { %v308_v57 = vor.u32 1.1754944e-38, %v307_v53  ;;  %vm306_vm7 = vcmp.eq.f32.partialorder %v305_v55, 8.507059e+37  ;;  %v130_v55 = vld [vmem:[%s129_s12] sm:$0x1] }
 0x1ea   :  { %132 = vst [vmem:[#allocation2 + $0x20] sm:$0x1] %v130_v55 }
 0x1ed   :  { %v835_v50 = vpop.eup %834 }
 0x1ee   :  { %v297_v51 = vmul.f32 %v835_v50, %v295_v49  ;;  %vm302_vm4 = vweird.f32 %v835_v50 }
 0x1ef   :  { %vm303_vm6 = vmor %vm301_vm5, %vm302_vm4 }
 0x1f0   :  { %v298_v52 = vsub.f32 1.0, %v297_v51 }
 0x1f2   :  { %v299_v54 = vmul.f32 %v835_v50, %v298_v52 }
 0x1f4   :  { %v300_v56 = vadd.f32 %v835_v50, %v299_v54 }
 0x1f6   :  { %v304_v58 = vsel %vm303_vm6, %v835_v50, %v300_v56  ;;  %v135_v56 = vld [vmem:[%s134_s13] sm:$0x1] }
 0x1f7   :  { %v309_v59 = vsel %vm306_vm7, %v308_v57, %v304_v58  ;;  %136 = vst [vmem:[#allocation2 + $0x21] sm:$0x1] %v135_v56 }
 0x1f8   :  { %311 = vrot.lane.b32.xlu1 %v309_v59, %s991_s29 }
 0x200   :  { %313 = vrot.lane.b32.xlu1 %v309_v59, %s1000_s3 }
 0x26a   :  { %v312_v62 = vpop.permute.xlu1 %311 }
 0x26b   :  { %v315_v63 = vmul.f32 %v312_v62, %v288_v44 }
 0x26d   :  { %v316_v0 = vadd.f32 %v315_v63, %v276_v42 }
 0x26f   :  { %836 = vtanh.f32 %v316_v0 }
 0x272   :  { %v314_v3 = vpop.permute.xlu1 %313 }
 0x275   :  { %v837_v1 = vpop.eup %836 }
 0x276   :  { %v318_v2 = vsub.f32 %v275_v40, %v837_v1 }
 0x278   :  { %v319_v4 = vmul.f32 %v318_v2, %v314_v3  ;;  %v411_v2 = vld [vmem:[#allocation2 + $0x20] sm:$0xff] }
 0x27a   :  { %v320_v5 = vadd.f32 %v837_v1, %v319_v4 }
 0x27c   :  { %v322_v6 = vpack.c.bf16 %v320_v5, %v320_v5 }
 0x27e   :  { %331 = vmatmul.bf16.vlgmr.msra.gmra.mxu2 %v322_v6 }
 0x301   :  { %v332_v8 = vpop.f32.mrf.mxu2 }
 0x302   :  { %v333_v9 = vadd.f32 %v1056_v12, %v332_v8 }
 0x304   :  { %v336_v10 = vadd.f32 %v333_v9, %v321_v7 }
 0x306   :  { %v758_v11 = vmul.f32 -1.442695, %v336_v10 }
 0x308   :  { %838 = vpow2.f32 %v758_v11 }
 0x309   :  { %v334_v13 = vpop.f32.mrf.mxu2 }
 0x30e   :  { %v839_v14 = vpop.eup %838 }
 0x30f   :  { %v340_v15 = vadd.f32 1.0, %v839_v14 }
 0x311   :  { %840 = vrcp.f32 %v340_v15  ;;  %v352_v19 = vand.u32 2147483648, %v340_v15  ;;  %v350_v21 = vand.u32 2147483647, %v340_v15  ;;  %vm346_vm9 = vweird.f32 %v340_v15 }
 0x313   :  { %v353_v23 = vor.u32 1.1754944e-38, %v352_v19  ;;  %vm351_vm11 = vcmp.eq.f32.partialorder %v350_v21, 8.507059e+37  ;;  %v139_v21 = vld [vmem:[%s138_s15] sm:$0x1] }
 0x314   :  { %141 = vst [vmem:[#allocation2 + $0x28] sm:$0x1] %v139_v21 }
 0x317   :  { %v841_v16 = vpop.eup %840 }
 0x318   :  { %v342_v17 = vmul.f32 %v841_v16, %v340_v15  ;;  %vm347_vm8 = vweird.f32 %v841_v16 }
 0x319   :  { %vm348_vm10 = vmor %vm346_vm9, %vm347_vm8 }
 0x31a   :  { %v343_v18 = vsub.f32 1.0, %v342_v17 }
 0x31c   :  { %v344_v20 = vmul.f32 %v841_v16, %v343_v18 }
 0x31e   :  { %v345_v22 = vadd.f32 %v841_v16, %v344_v20 }
 0x320   :  { %v349_v24 = vsel %vm348_vm10, %v841_v16, %v345_v22  ;;  %v144_v22 = vld [vmem:[%s143_s16] sm:$0x1] }
 0x321   :  { %v354_v25 = vsel %vm351_vm11, %v353_v23, %v349_v24  ;;  %145 = vst [vmem:[#allocation2 + $0x29] sm:$0x1] %v144_v22 }
 0x322   :  { %356 = vrot.lane.b32.xlu2 %v354_v25, %s991_s29 }
 0x32a   :  { %358 = vrot.lane.b32.xlu2 %v354_v25, %s1000_s3 }
 0x37c   :  { %v357_v28 = vpop.permute.xlu2 %356 }
 0x37d   :  { %v360_v29 = vmul.f32 %v357_v28, %v333_v9 }
 0x37f   :  { %v361_v30 = vadd.f32 %v360_v29, %v321_v7 }
 0x381   :  { %842 = vtanh.f32 %v361_v30 }
 0x384   :  { %v359_v33 = vpop.permute.xlu2 %358 }
 0x387   :  { %v843_v31 = vpop.eup %842 }
 0x388   :  { %v363_v32 = vsub.f32 %v320_v5, %v843_v31 }
 0x38a   :  { %v364_v34 = vmul.f32 %v363_v32, %v359_v33  ;;  %v456_v32 = vld [vmem:[#allocation2 + $0x28] sm:$0xff] }
 0x38c   :  { %v365_v35 = vadd.f32 %v843_v31, %v364_v34 }
 0x38e   :  { %v367_v36 = vpack.c.bf16 %v365_v35, %v365_v35 }
 0x390   :  { %376 = vmatmul.bf16.vlgmr.msra.gmra.mxu3 %v367_v36 }
 0x413   :  { %v377_v38 = vpop.f32.mrf.mxu3 }
 0x414   :  { %v378_v39 = vadd.f32 %v1056_v12, %v377_v38 }
 0x416   :  { %v381_v40 = vadd.f32 %v378_v39, %v366_v37 }
 0x418   :  { %v759_v41 = vmul.f32 -1.442695, %v381_v40 }
 0x41a   :  { %844 = vpow2.f32 %v759_v41 }
 0x41b   :  { %v379_v42 = vpop.f32.mrf.mxu3 }
 0x420   :  { %v845_v43 = vpop.eup %844 }
 0x421   :  { %v385_v44 = vadd.f32 1.0, %v845_v43 }
 0x423   :  { %846 = vrcp.f32 %v385_v44  ;;  %v397_v48 = vand.u32 2147483648, %v385_v44  ;;  %v395_v50 = vand.u32 2147483647, %v385_v44  ;;  %vm391_vm13 = vweird.f32 %v385_v44 }
 0x425   :  { %v398_v52 = vor.u32 1.1754944e-38, %v397_v48  ;;  %vm396_vm15 = vcmp.eq.f32.partialorder %v395_v50, 8.507059e+37  ;;  %v148_v50 = vld [vmem:[%s147_s4] sm:$0x1] }
 0x426   :  { %150 = vst [vmem:[#allocation2 + $0x30] sm:$0x1] %v148_v50  ;;  %v805_v50 = vld [vmem:[#allocation10 + $0x8] sm:$0xff] }
 0x429   :  { %v847_v45 = vpop.eup %846 }
 0x42a   :  { %v387_v46 = vmul.f32 %v847_v45, %v385_v44  ;;  %vm392_vm12 = vweird.f32 %v847_v45 }
 0x42b   :  { %vm393_vm14 = vmor %vm391_vm13, %vm392_vm12 }
 0x42c   :  { %v388_v47 = vsub.f32 1.0, %v387_v46 }
 0x42e   :  { %v389_v49 = vmul.f32 %v847_v45, %v388_v47 }
 0x430   :  { %v390_v51 = vadd.f32 %v847_v45, %v389_v49 }
 0x432   :  { %v394_v53 = vsel %vm393_vm14, %v847_v45, %v390_v51  ;;  %v153_v51 = vld [vmem:[%s152_s18] sm:$0x1] }
 0x433   :  { %v399_v54 = vsel %vm396_vm15, %v398_v52, %v394_v53  ;;  %154 = vst [vmem:[#allocation2 + $0x31] sm:$0x1] %v153_v51  ;;  %v804_v51 = vld [vmem:[#allocation10] sm:$0xff] }
 0x434   :  { %403 = vrot.lane.b32.xlu1 %v399_v54, %s1000_s3  ;;  %401 = vrot.lane.b32.xlu0 %v399_v54, %s991_s29 }
 0x4a6   :  { %v402_v57 = vpop.permute.xlu0 %401  ;;  %v404_v62 = vpop.permute.xlu1 %403 }
 0x4a7   :  { %v405_v58 = vmul.f32 %v402_v57, %v378_v39 }
 0x4a9   :  { %v406_v59 = vadd.f32 %v405_v58, %v366_v37 }
 0x4ab   :  { %848 = vtanh.f32 %v406_v59 }
 0x4b1   :  { %v849_v60 = vpop.eup %848 }
 0x4b2   :  { %v408_v61 = vsub.f32 %v365_v35, %v849_v60 }
 0x4b4   :  { %v409_v63 = vmul.f32 %v408_v61, %v404_v62  ;;  %v501_v61 = vld [vmem:[#allocation2 + $0x30] sm:$0xff] }
 0x4b6   :  { %v410_v0 = vadd.f32 %v849_v60, %v409_v63 }
 0x4b8   :  { %v412_v1 = vpack.c.bf16 %v410_v0, %v410_v0 }
 0x4ba   :  { %421 = vmatmul.bf16.vlgmr.msrb.gmra.mxu0 %v412_v1 }
 0x537   :  { %v422_v3 = vpop.f32.mrf.mxu0 }
 0x538   :  { %v423_v4 = vadd.f32 %v1056_v12, %v422_v3 }
 0x53a   :  { %v426_v5 = vadd.f32 %v423_v4, %v411_v2 }
 0x53c   :  { %v760_v6 = vmul.f32 -1.442695, %v426_v5 }
 0x53e   :  { %850 = vpow2.f32 %v760_v6 }
 0x53f   :  { %v424_v7 = vpop.f32.mrf.mxu0 }
 0x544   :  { %v851_v8 = vpop.eup %850 }
 0x545   :  { %v430_v9 = vadd.f32 1.0, %v851_v8 }
 0x547   :  { %852 = vrcp.f32 %v430_v9  ;;  %v442_v14 = vand.u32 2147483648, %v430_v9  ;;  %v440_v16 = vand.u32 2147483647, %v430_v9  ;;  %vm436_vm1 = vweird.f32 %v430_v9 }
 0x549   :  { %v443_v18 = vor.u32 1.1754944e-38, %v442_v14  ;;  %vm441_vm3 = vcmp.eq.f32.partialorder %v440_v16, 8.507059e+37  ;;  %v157_v16 = vld [vmem:[%s156_s21] sm:$0x1] }
 0x54a   :  { %159 = vst [vmem:[#allocation2 + $0x38] sm:$0x1] %v157_v16 }
 0x54d   :  { %v853_v10 = vpop.eup %852 }
 0x54e   :  { %v432_v11 = vmul.f32 %v853_v10, %v430_v9  ;;  %vm437_vm0 = vweird.f32 %v853_v10 }
 0x54f   :  { %vm438_vm2 = vmor %vm436_vm1, %vm437_vm0 }
 0x550   :  { %v433_v13 = vsub.f32 1.0, %v432_v11 }
 0x552   :  { %v434_v15 = vmul.f32 %v853_v10, %v433_v13 }
 0x554   :  { %v435_v17 = vadd.f32 %v853_v10, %v434_v15 }
 0x556   :  { %v439_v19 = vsel %vm438_vm2, %v853_v10, %v435_v17  ;;  %v162_v17 = vld [vmem:[%s161_s22] sm:$0x1] }
 0x557   :  { %v444_v20 = vsel %vm441_vm3, %v443_v18, %v439_v19  ;;  %163 = vst [vmem:[#allocation2 + $0x39] sm:$0x1] %v162_v17 }
 0x558   :  { %448 = vrot.lane.b32.xlu0 %v444_v20, %s1000_s3  ;;  %446 = vrot.lane.b32.xlu2 %v444_v20, %s991_s29 }
 0x5b2   :  { %v447_v23 = vpop.permute.xlu2 %446 }
 0x5b3   :  { %v450_v24 = vmul.f32 %v447_v23, %v423_v4 }
 0x5b5   :  { %v451_v25 = vadd.f32 %v450_v24, %v411_v2 }
 0x5b7   :  { %854 = vtanh.f32 %v451_v25 }
 0x5bd   :  { %v855_v26 = vpop.eup %854 }
 0x5be   :  { %v453_v27 = vsub.f32 %v410_v0, %v855_v26 }
 0x5ca   :  { %v449_v28 = vpop.permute.xlu0 %448 }
 0x5cb   :  { %v454_v29 = vmul.f32 %v453_v27, %v449_v28  ;;  %v546_v27 = vld [vmem:[#allocation2 + $0x38] sm:$0xff] }
 0x5cd   :  { %v455_v30 = vadd.f32 %v855_v26, %v454_v29 }
 0x5cf   :  { %v457_v31 = vpack.c.bf16 %v455_v30, %v455_v30 }
 0x5d1   :  { %466 = vmatmul.bf16.vlgmr.msrb.gmra.mxu1 %v457_v31 }
 0x64e   :  { %v467_v33 = vpop.f32.mrf.mxu1 }
 0x64f   :  { %v468_v34 = vadd.f32 %v1056_v12, %v467_v33 }
 0x651   :  { %v471_v35 = vadd.f32 %v468_v34, %v456_v32 }
 0x653   :  { %v761_v36 = vmul.f32 -1.442695, %v471_v35 }
 0x655   :  { %856 = vpow2.f32 %v761_v36 }
 0x656   :  { %v469_v37 = vpop.f32.mrf.mxu1 }
 0x65b   :  { %v857_v38 = vpop.eup %856 }
 0x65c   :  { %v475_v39 = vadd.f32 1.0, %v857_v38 }
 0x65e   :  { %858 = vrcp.f32 %v475_v39  ;;  %v487_v43 = vand.u32 2147483648, %v475_v39  ;;  %v485_v45 = vand.u32 2147483647, %v475_v39  ;;  %vm481_vm5 = vweird.f32 %v475_v39 }
 0x660   :  { %v488_v47 = vor.u32 1.1754944e-38, %v487_v43  ;;  %vm486_vm7 = vcmp.eq.f32.partialorder %v485_v45, 8.507059e+37  ;;  %v810_v45 = vld [vmem:[#allocation10 + $0x30] sm:$0xff] }
 0x664   :  { %v859_v40 = vpop.eup %858 }
 0x665   :  { %v477_v41 = vmul.f32 %v859_v40, %v475_v39  ;;  %vm482_vm4 = vweird.f32 %v859_v40 }
 0x666   :  { %vm483_vm6 = vmor %vm481_vm5, %vm482_vm4 }
 0x667   :  { %v478_v42 = vsub.f32 1.0, %v477_v41 }
 0x669   :  { %v479_v44 = vmul.f32 %v859_v40, %v478_v42 }
 0x66b   :  { %v480_v46 = vadd.f32 %v859_v40, %v479_v44 }
 0x66d   :  { %v484_v48 = vsel %vm483_vm6, %v859_v40, %v480_v46  ;;  %v809_v46 = vld [vmem:[#allocation10 + $0x28] sm:$0xff] }
 0x66e   :  { %v489_v49 = vsel %vm486_vm7, %v488_v47, %v484_v48  ;;  %v808_v47 = vld [vmem:[#allocation10 + $0x20] sm:$0xff]  ;;  %v807_v48 = vld [vmem:[#allocation10 + $0x18] sm:$0xff] }
 0x66f   :  { %493 = vrot.lane.b32.xlu2 %v489_v49, %s1000_s3  ;;  %491 = vrot.lane.b32.xlu1 %v489_v49, %s991_s29  ;;  %v806_v49 = vld [vmem:[#allocation10 + $0x10] sm:$0xff] }
 0x6c9   :  { %v494_v57 = vpop.permute.xlu2 %493 }
 0x6e1   :  { %v492_v52 = vpop.permute.xlu1 %491 }
 0x6e2   :  { %v495_v53 = vmul.f32 %v492_v52, %v468_v34 }
 0x6e4   :  { %v496_v54 = vadd.f32 %v495_v53, %v456_v32 }
 0x6e6   :  { %860 = vtanh.f32 %v496_v54 }
 0x6ec   :  { %v861_v55 = vpop.eup %860 }
 0x6ed   :  { %v498_v56 = vsub.f32 %v455_v30, %v861_v55  ;;  %v811_v30 = vld [vmem:[#allocation10 + $0x38] sm:$0xff] }
 0x6ee   :  { %660 = vmatpush.bf16.msra.mxu0 %v811_v30 }
 0x6ef   :  { %v499_v58 = vmul.f32 %v498_v56, %v494_v57 }
 0x6f1   :  { %v500_v59 = vadd.f32 %v861_v55, %v499_v58 }
 0x6f2   :  { %661 = vmatpush.bf16.msra.mxu0 %v810_v45 }
 0x6f3   :  { %v502_v60 = vpack.c.bf16 %v500_v59, %v500_v59 }
 0x6f5   :  { %511 = vmatmul.bf16.vlgmr.msrb.gmra.mxu2 %v502_v60 }
 0x6f6   :  { %662 = vmatpush.bf16.msra.mxu0 %v809_v46 }
 0x6fa   :  { %663 = vmatpush.bf16.msra.mxu0 %v808_v47 }
 0x6fe   :  { %664 = vmatpush.bf16.msra.mxu0 %v807_v48 }
 0x702   :  { %665 = vmatpush.bf16.msra.mxu0 %v806_v49 }
 0x706   :  { %666 = vmatpush.bf16.msra.mxu0 %v805_v50 }
 0x70a   :  { %667 = vmatpush.bf16.msra.mxu0 %v804_v51 }
 0x778   :  { %v512_v62 = vpop.f32.mrf.mxu2 }
 0x779   :  { %v513_v63 = vadd.f32 %v1056_v12, %v512_v62 }
 0x77b   :  { %v516_v0 = vadd.f32 %v513_v63, %v501_v61 }
 0x77d   :  { %v762_v1 = vmul.f32 -1.442695, %v516_v0 }
 0x77f   :  { %862 = vpow2.f32 %v762_v1 }
 0x780   :  { %v514_v2 = vpop.f32.mrf.mxu2 }
 0x785   :  { %v863_v3 = vpop.eup %862 }
 0x786   :  { %v520_v4 = vadd.f32 1.0, %v863_v3 }
 0x788   :  { %864 = vrcp.f32 %v520_v4  ;;  %v532_v8 = vand.u32 2147483648, %v520_v4  ;;  %v530_v10 = vand.u32 2147483647, %v520_v4  ;;  %vm526_vm9 = vweird.f32 %v520_v4 }
 0x78a   :  { %v533_v13 = vor.u32 1.1754944e-38, %v532_v8  ;;  %vm531_vm11 = vcmp.eq.f32.partialorder %v530_v10, 8.507059e+37 }
 0x78e   :  { %v865_v5 = vpop.eup %864 }
 0x78f   :  { %v522_v6 = vmul.f32 %v865_v5, %v520_v4  ;;  %vm527_vm8 = vweird.f32 %v865_v5 }
 0x790   :  { %vm528_vm10 = vmor %vm526_vm9, %vm527_vm8 }
 0x791   :  { %v523_v7 = vsub.f32 1.0, %v522_v6 }
 0x793   :  { %v524_v9 = vmul.f32 %v865_v5, %v523_v7 }
 0x795   :  { %v525_v11 = vadd.f32 %v865_v5, %v524_v9 }
 0x797   :  { %v529_v14 = vsel %vm528_vm10, %v865_v5, %v525_v11 }
 0x798   :  { %v534_v15 = vsel %vm531_vm11, %v533_v13, %v529_v14 }
 0x799   :  { %538 = vrot.lane.b32.xlu1 %v534_v15, %s1000_s3  ;;  %536 = vrot.lane.b32.xlu0 %v534_v15, %s991_s29 }
 0x80b   :  { %v537_v18 = vpop.permute.xlu0 %536  ;;  %v539_v23 = vpop.permute.xlu1 %538 }
 0x80c   :  { %v540_v19 = vmul.f32 %v537_v18, %v513_v63 }
 0x80e   :  { %v541_v20 = vadd.f32 %v540_v19, %v501_v61  ;;  %v825_v61 = vld [vmem:[%s1093_s5] ss:$0 sm:$0xff] }
 0x810   :  { %866 = vtanh.f32 %v541_v20 }
 0x816   :  { %v867_v21 = vpop.eup %866 }
 0x817   :  { %v543_v22 = vsub.f32 %v500_v59, %v867_v21 }
 0x819   :  { %v544_v24 = vmul.f32 %v543_v22, %v539_v23 }
 0x81b   :  { %v545_v25 = vadd.f32 %v867_v21, %v544_v24 }
 0x81d   :  { %v547_v26 = vpack.c.bf16 %v545_v25, %v545_v25 }
 0x81f   :  { %556 = vmatmul.bf16.vlgmr.msrb.gmra.mxu3 %v547_v26 }
 0x8a2   :  { %v557_v28 = vpop.f32.mrf.mxu3 }
 0x8a3   :  { %v558_v29 = vadd.f32 %v1056_v12, %v557_v28 }
 0x8a5   :  { %v561_v31 = vadd.f32 %v558_v29, %v546_v27 }
 0x8a7   :  { %v763_v32 = vmul.f32 -1.442695, %v561_v31 }
 0x8a9   :  { %868 = vpow2.f32 %v763_v32 }
 0x8aa   :  { %v559_v33 = vpop.f32.mrf.mxu3 }
 0x8af   :  { %v869_v34 = vpop.eup %868 }
 0x8b0   :  { %v565_v35 = vadd.f32 1.0, %v869_v34 }
 0x8b2   :  { %870 = vrcp.f32 %v565_v35  ;;  %v577_v39 = vand.u32 2147483648, %v565_v35  ;;  %v575_v41 = vand.u32 2147483647, %v565_v35  ;;  %vm571_vm13 = vweird.f32 %v565_v35 }
 0x8b4   :  { %v578_v12 = vor.u32 1.1754944e-38, %v577_v39  ;;  %vm576_vm15 = vcmp.eq.f32.partialorder %v575_v41, 8.507059e+37 }
 0x8b8   :  { %v871_v36 = vpop.eup %870 }
 0x8b9   :  { %v567_v37 = vmul.f32 %v871_v36, %v565_v35  ;;  %vm572_vm12 = vweird.f32 %v871_v36 }
 0x8ba   :  { %vm573_vm14 = vmor %vm571_vm13, %vm572_vm12 }
 0x8bb   :  { %v568_v38 = vsub.f32 1.0, %v567_v37 }
 0x8bd   :  { %v569_v40 = vmul.f32 %v871_v36, %v568_v38 }
 0x8bf   :  { %v570_v42 = vadd.f32 %v871_v36, %v569_v40 }
 0x8c1   :  { %v574_v43 = vsel %vm573_vm14, %v871_v36, %v570_v42 }
 0x8c2   :  { %v579_v44 = vsel %vm576_vm15, %v578_v12, %v574_v43 }
 0x8c3   :  { %583 = vrot.lane.b32.xlu0 %v579_v44, %s1000_s3  ;;  %581 = vrot.lane.b32.xlu2 %v579_v44, %s991_s29 }
 0x91d   :  { %v582_v52 = vpop.permute.xlu2 %581 }
 0x91e   :  { %v585_v53 = vmul.f32 %v582_v52, %v558_v29 }
 0x920   :  { %v586_v54 = vadd.f32 %v585_v53, %v546_v27 }
 0x922   :  { %872 = vtanh.f32 %v586_v54 }
 0x928   :  { %v873_v55 = vpop.eup %872 }
 0x929   :  { %v588_v56 = vsub.f32 %v545_v25, %v873_v55 }
 0x935   :  { %v584_v57 = vpop.permute.xlu0 %583 }
 0x936   :  { %v589_v58 = vmul.f32 %v588_v56, %v584_v57 }
 0x938   :  { %v590_v59 = vadd.f32 %v873_v55, %v589_v58 }
 0x93a   :  { %v591_v60 = vpack.c.bf16 %v590_v59, %v590_v59 }
 0x93c   :  { %668 = vmatmul.bf16.vlgmr.msra.gmra.mxu0 %v591_v60 }
 0x9b9   :  { %v669_v62 = vpop.f32.mrf.mxu0 }
 0x9ba   :  { %v670_v63 = vadd.f32 %v825_v61, %v669_v62 }
 0x9bc   :  { %673 = vst [vmem:[#allocation11] sm:$0xff] %v670_v63 }
 0x9bd   :  { %684 = dma.vmem_to_hbm [thread:$0]  %s680_s24, 128, %s682_s27, [#allocation5]  }
 0x9c1   :  { %v671_v0 = vpop.f32.mrf.mxu0 }
 0x9c2   :  { %988 = dma.done.wait [#allocation5], 128  }
 0x9c3   :  { %989 = vsyncadd [#allocation5], 4294967168 }
 0x9c4   :  { %689 = vsyncpa [#allocation4], 1 }
 0x9c5   :  { %690 = vsyncpa [#allocation9], 1 }
 0x9c6   :  { %691 = vsyncpa [#allocation5], 1 }
 0x9c7   :  { %692 = vsyncpa [#allocation6], 1 }

</bundles_post_ra>
